<compile_context>
chip_gen: v6e
topology: v6e:2x2x1
jax: 0.10.0
libtpu: 0.0.40
codegen_flags: <defaults>
</compile_context>

<pallas_src>
import functools
import math

import jax
import jax.numpy as jnp
from jax import lax
from jax.experimental import pallas as pl
from jax.experimental.pallas import tpu as pltpu


def _vmem_capacity_bytes():
  """Best-effort VMEM capacity query; falls back to the v7x floor (64 MiB)."""
  try:
    info = pltpu.get_tpu_info()
    cap = getattr(info, "vmem_capacity_bytes", None)
    if cap:
      return int(cap)
  except Exception:
    pass
  return 64 * 1024 * 1024


def _pick_block_sizes(B, L, S, E, mm_bytes, res_bytes, out_bytes, n_kv,
                      budget_bytes, target_steps=8):
  """Pick (block_b, block_l) from a VMEM byte budget, targeting >=8 grid steps."""
  bb_opts = sorted({d for d in range(1, B + 1) if B % d == 0}, reverse=True)
  bl_opts = sorted({d for d in range(8, L + 1, 8) if L % d == 0} | {L},
                   reverse=True)

  def vmem_est(bb, bl):
    f32 = 4
    # Double-buffered activation blocks (q, residual, k/v or kv, output).
    act = 2 * bb * E * (bl * mm_bytes + bl * res_bytes
                        + n_kv * S * mm_bytes + bl * out_bytes)
    # Single-buffered weights / biases / LN params.
    wts = 4 * E * E * mm_bytes + 8 * E * f32
    # f32 projections + matmul-dtype casts, one head's scores/probs, tail temps.
    inter = bb * E * (bl + 2 * S) * (f32 + mm_bytes)
    inter += 3 * bb * bl * S * f32
    inter += bb * bl * E * (mm_bytes + 3 * f32)
    return int(1.3 * (act + wts + inter))

  cands = sorted(((bb, bl) for bb in bb_opts for bl in bl_opts),
                 key=lambda t: (t[0] * t[1], t[1]), reverse=True)
  achievable = max((B // bb) * (L // bl) for bb, bl in cands)
  target = min(target_steps, achievable)
  for bb, bl in cands:  # decreasing block volume
    steps = (B // bb) * (L // bl)
    if steps >= target and vmem_est(bb, bl) <= budget_bytes:
      return bb, bl
  return bb_opts[-1], bl_opts[-1]


def _residual_attention_kernel(*refs, n_head, eps, fuse_kv, approx_recip):
  """One grid step: projections + MHA + output proj + residual + LayerNorm."""
  if fuse_kv:
    (q_ref, kv_ref, res_ref,
     wq_ref, wkv_ref, bq_ref, bkv_ref,
     wo_ref, bo_ref, gamma_ref, beta_ref, out_ref) = refs
  else:
    (q_ref, k_ref, v_ref, res_ref,
     wq_ref, wk_ref, wv_ref, bq_ref, bk_ref, bv_ref,
     wo_ref, bo_ref, gamma_ref, beta_ref, out_ref) = refs

  tb, lq, d_model = q_ref.shape
  head_dim = d_model // n_head
  mdt = wq_ref.dtype  # matmul operand dtype (f32 or bf16)

  # ---- Input projections (softmax scale already folded into Wq/bq). -------
  q2 = q_ref[...].reshape(tb * lq, d_model)
  qp = jnp.dot(q2, wq_ref[...], preferred_element_type=jnp.float32) + bq_ref[...]

  if fuse_kv:
    sk = kv_ref.shape[1]
    kv2 = kv_ref[...].reshape(tb * sk, d_model)
    kvp = jnp.dot(kv2, wkv_ref[...],
                  preferred_element_type=jnp.float32) + bkv_ref[...]
    kp = kvp[:, :d_model]
    vp = kvp[:, d_model:]
  else:
    sk = k_ref.shape[1]
    k2 = k_ref[...].reshape(tb * sk, d_model)
    v2 = v_ref[...].reshape(tb * sk, d_model)
    kp = jnp.dot(k2, wk_ref[...], preferred_element_type=jnp.float32) + bk_ref[...]
    vp = jnp.dot(v2, wv_ref[...], preferred_element_type=jnp.float32) + bv_ref[...]

  qp = qp.astype(mdt).reshape(tb, lq, d_model)
  kp = kp.astype(mdt).reshape(tb, sk, d_model)
  vp = vp.astype(mdt).reshape(tb, sk, d_model)

  # Batched-over-TB contractions (no explicit K transpose materialized).
  dn_qk = (((2,), (2,)), ((0,), (0,)))   # contract head_dim
  dn_pv = (((2,), (1,)), ((0,), (0,)))   # contract S

  # ---- Per-head attention; contexts concatenated for ONE K=E output proj. --
  # NOTE(v6e/v7x): once projections are MXU-efficient, the single EUP can bind
  # on jnp.exp for small head_dim -- keep extra EUP/VALU work out of this loop.
  ctx_heads = []
  for h in range(n_head):
    lo = h * head_dim
    hi = lo + head_dim
    qh = qp[:, :, lo:hi]                 # (TB, L, hd)
    kh = kp[:, :, lo:hi]                 # (TB, S, hd)
    vh = vp[:, :, lo:hi]                 # (TB, S, hd)

    scores = lax.dot_general(qh, kh, dn_qk,
                             preferred_element_type=jnp.float32)   # (TB, L, S)
    m = jnp.max(scores, axis=-1, keepdims=True)
    p = jnp.exp(scores - m)
    denom = jnp.sum(p, axis=-1, keepdims=True)
    attn = (p * pl.reciprocal(denom, approx=approx_recip)).astype(mdt)

    ctx_heads.append(
        lax.dot_general(attn, vh, dn_pv,
                        preferred_element_type=jnp.float32).astype(mdt))

  ctx = jnp.concatenate(ctx_heads, axis=-1).reshape(tb * lq, d_model)
  proj = jnp.dot(ctx, wo_ref[...],
                 preferred_element_type=jnp.float32) + bo_ref[...]   # K=E

  # ---- Residual add + LayerNorm (f32, biased variance like PyTorch). ------
  y = res_ref[...].astype(jnp.float32).reshape(tb * lq, d_model) + proj
  mean = jnp.mean(y, axis=-1, keepdims=True)
  cent = y - mean
  var = jnp.mean(cent * cent, axis=-1, keepdims=True)
  out = cent * lax.rsqrt(var + eps) * gamma_ref[...] + beta_ref[...]

  out_ref[...] = out.reshape(tb, lq, d_model).astype(out_ref.dtype)


def residual_attention(query, key=None, value=None, residual=None, params=None,
                       *, n_head, eps=1e-5, matmul_dtype=jnp.float32,
                       block_b=None, block_l=None, vmem_budget_bytes=None,
                       softmax_approx_recip=True):
  """Post-norm ResidualAttention forward. Activations are (B, L, E).

  matmul_dtype=jnp.bfloat16 is recommended on v5e, v6e and v7x (the MXU is
  bf16-native on all three); softmax / LayerNorm math stays f32 either way.
  """
  if key is None:
    key = query
  if value is None:
    value = query
  if residual is None:
    raise ValueError("residual must be provided for the post-norm path.")
  if params is None:
    raise ValueError("params dict is required.")

  B, L, E = query.shape
  S = key.shape[1]
  assert E % n_head == 0
  head_dim = E // n_head
  scale = 1.0 / math.sqrt(head_dim)

  fuse_kv = key is value           # common DETR path (self-attn or k==v memory)
  out_dtype = query.dtype

  # ---- VMEM budget / block sizing (per generation). ------------------------
  cap = _vmem_capacity_bytes()                    # 128 MiB v5e/v6e, 64 MiB v7x
  if vmem_budget_bytes is None:
    vmem_budget_bytes = int(0.60 * cap)
  vmem_limit_bytes = int(min(0.85 * cap, 128 * 1024 * 1024))

  mm_bytes = jnp.dtype(matmul_dtype).itemsize
  res_bytes = jnp.dtype(residual.dtype).itemsize
  out_bytes = jnp.dtype(out_dtype).itemsize
  n_kv = 1 if fuse_kv else 2

  if block_b is None or block_l is None:
    auto_bb, auto_bl = _pick_block_sizes(B, L, S, E, mm_bytes, res_bytes,
                                         out_bytes, n_kv, vmem_budget_bytes)
    if block_b is None:
      block_b = auto_bb
    if block_l is None:
      block_l = auto_bl
  assert B % block_b == 0, (B, block_b)
  assert L % block_l == 0 and (block_l % 8 == 0 or block_l == L), (L, block_l)
  grid = (B // block_b, L // block_l)

  # ---- Host-side parameter prep (PyTorch computes x @ W.T -> pre-transpose;
  # fold softmax scale into Wq/bq; fuse Wk|Wv when key is value). ------------
  wq = (params["wq"] * scale).T.astype(matmul_dtype)
  wo = params["wo"].T.astype(matmul_dtype)
  bq = (params["bq"] * scale).reshape(1, E).astype(jnp.float32)
  bo = params["bo"].reshape(1, E).astype(jnp.float32)
  gamma = params["gamma"].reshape(1, E).astype(jnp.float32)
  beta = params["beta"].reshape(1, E).astype(jnp.float32)

  q_in = query.astype(matmul_dtype)
  res_in = residual                 # original dtype; cast to f32 inside kernel

  if fuse_kv:
    kv_in = key.astype(matmul_dtype)
    wkv = jnp.concatenate([params["wk"].T, params["wv"].T],
                          axis=1).astype(matmul_dtype)          # (E, 2E)
    bkv = jnp.concatenate([params["bk"], params["bv"]]
                          ).reshape(1, 2 * E).astype(jnp.float32)
  else:
    k_in = key.astype(matmul_dtype)
    v_in = value.astype(matmul_dtype)
    wk = params["wk"].T.astype(matmul_dtype)
    wv = params["wv"].T.astype(matmul_dtype)
    bk = params["bk"].reshape(1, E).astype(jnp.float32)
    bv = params["bv"].reshape(1, E).astype(jnp.float32)

  kernel = functools.partial(_residual_attention_kernel, n_head=n_head, eps=eps,
                             fuse_kv=fuse_kv, approx_recip=softmax_approx_recip)

  q_spec = pl.BlockSpec((block_b, block_l, E), lambda b, l: (b, l, 0))
  kv_spec = pl.BlockSpec((block_b, S, E), lambda b, l: (b, 0, 0))

  def _call(single_buffer_weights):
    if single_buffer_weights:
      def const_spec(shape):   # constant across the grid -> single buffer
        return pl.BlockSpec(shape, lambda b, l: (0, 0),
                            pipeline_mode=pl.Buffered(1))
    else:
      def const_spec(shape):
        return pl.BlockSpec(shape, lambda b, l: (0, 0))

    if fuse_kv:
      in_specs = [q_spec, kv_spec, q_spec,
                  const_spec((E, E)), const_spec((E, 2 * E)),
                  const_spec((1, E)), const_spec((1, 2 * E)),
                  const_spec((E, E)), const_spec((1, E)),
                  const_spec((1, E)), const_spec((1, E))]
      args = (q_in, kv_in, res_in, wq, wkv, bq, bkv, wo, bo, gamma, beta)
    else:
      in_specs = [q_spec, kv_spec, kv_spec, q_spec,
                  const_spec((E, E)), const_spec((E, E)), const_spec((E, E)),
                  const_spec((1, E)), const_spec((1, E)), const_spec((1, E)),
                  const_spec((E, E)), const_spec((1, E)),
                  const_spec((1, E)), const_spec((1, E))]
      args = (q_in, k_in, v_in, res_in, wq, wk, wv, bq, bk, bv,
              wo, bo, gamma, beta)

    return pl.pallas_call(
        kernel,
        out_shape=jax.ShapeDtypeStruct((B, L, E), out_dtype),
        grid_spec=pltpu.PrefetchScalarGridSpec(
            num_scalar_prefetch=0,
            grid=grid,
            in_specs=in_specs,
            out_specs=q_spec,
        ),
        compiler_params=pltpu.CompilerParams(
            dimension_semantics=("parallel", "parallel"),
            vmem_limit_bytes=vmem_limit_bytes,
        ),
    )(*args)

  try:
    return _call(True)
  except Exception:
    # pipeline_mode=pl.Buffered(1) unavailable on this jax/Mosaic build:
    # fall back to default double-buffered weight blocks (identical results).
    return _call(False)


def _reference(query, key, value, residual, params, *, n_head, eps=1e-5):
  """Pure-JAX f32 reference mirroring PyTorch MultiheadAttention + residual + LN."""
  B, L, E = query.shape
  hd = E // n_head
  scale = 1.0 / math.sqrt(hd)

  def proj(x, w, b):
    return jnp.einsum("ble,fe->blf", x, w) + b

  S = key.shape[1]
  qp = proj(query, params["wq"], params["bq"]).reshape(B, L, n_head, hd)
  kp = proj(key, params["wk"], params["bk"]).reshape(B, S, n_head, hd)
  vp = proj(value, params["wv"], params["bv"]).reshape(B, S, n_head, hd)

  scores = jnp.einsum("blhd,bshd->bhls", qp, kp) * scale
  attn = jax.nn.softmax(scores, axis=-1)
  out = jnp.einsum("bhls,bshd->blhd", attn, vp).reshape(B, L, E)
  out = jnp.einsum("ble,fe->blf", out, params["wo"]) + params["bo"]

  y = residual + out
  mean = jnp.mean(y, axis=-1, keepdims=True)
  var = jnp.mean((y - mean) ** 2, axis=-1, keepdims=True)
  return (y - mean) / jnp.sqrt(var + eps) * params["gamma"] + params["beta"]


if __name__ == "__main__":
  B, L, S, E, H = 2, 8, 8, 32, 4

  key0 = jax.random.PRNGKey(0)
  keys = jax.random.split(key0, 10)

  # Deterministic synthetic parameters (shapes per nn.MultiheadAttention(E, H)
  # and nn.LayerNorm(E)).
  params = {
      "wq": 0.1 * jax.random.normal(keys[0], (E, E), jnp.float32),
      "wk": 0.1 * jax.random.normal(keys[1], (E, E), jnp.float32),
      "wv": 0.1 * jax.random.normal(keys[2], (E, E), jnp.float32),
      "bq": 0.01 * jax.random.normal(keys[3], (E,), jnp.float32),
      "bk": 0.01 * jax.random.normal(keys[4], (E,), jnp.float32),
      "bv": 0.01 * jax.random.normal(keys[5], (E,), jnp.float32),
      "wo": 0.1 * jax.random.normal(keys[6], (E, E), jnp.float32),
      "bo": 0.01 * jax.random.normal(keys[7], (E,), jnp.float32),
      "gamma": jnp.ones((E,), jnp.float32),
      "beta": jnp.zeros((E,), jnp.float32),
  }

  data_keys = jax.random.split(keys[8], 4)
  query = jax.random.normal(data_keys[0], (B, L, E), jnp.float32)
  key_ = jax.random.normal(data_keys[1], (B, S, E), jnp.float32)
  value = jax.random.normal(data_keys[2], (B, S, E), jnp.float32)
  residual = jax.random.normal(data_keys[3], (B, L, E), jnp.float32)

  # 1) Cross-attention with distinct key/value (unfused KV path), f32 matmuls.
  ref = _reference(query, key_, value, residual, params, n_head=H)
  out_f32 = residual_attention(query, key_, value, residual, params, n_head=H)
  out_f32 = jax.block_until_ready(out_f32)
  assert out_f32.shape == (B, L, E)
  assert jnp.allclose(out_f32, ref, atol=2e-3, rtol=2e-3), "f32 mismatch vs reference"

  # 2) Same path with bf16 matmul operands (recommended on v5e/v6e/v7x).
  out_bf16 = residual_attention(query, key_, value, residual, params, n_head=H,
                                matmul_dtype=jnp.bfloat16)
  out_bf16 = jax.block_until_ready(out_bf16)
  assert jnp.allclose(out_bf16, ref, atol=5e-2, rtol=5e-2), "bf16 mismatch vs reference"

  # 3) Self-attention (key=value=query) -> fused (E, 2E) KV projection path.
  ref_self = _reference(query, query, query, residual, params, n_head=H)
  out_self = residual_attention(query, residual=residual, params=params, n_head=H)
  out_self = jax.block_until_ready(out_self)
  assert jnp.allclose(out_self, ref_self, atol=2e-3, rtol=2e-3), "fused-KV mismatch"

  print("KERNEL_OK")
</pallas_src>

<mosaic_0001>
module attributes {stable_mosaic.version = 11 : i64} {
  func.func @_residual_attention_kernel(%arg0: i32, %arg1: i32, %arg2: memref<1x8x32xf32, #tpu.memory_space<vmem>>, %arg3: memref<1x8x32xf32, #tpu.memory_space<vmem>>, %arg4: memref<1x8x32xf32, #tpu.memory_space<vmem>>, %arg5: memref<1x8x32xf32, #tpu.memory_space<vmem>>, %arg6: memref<32x32xf32, #tpu.memory_space<vmem>>, %arg7: memref<32x32xf32, #tpu.memory_space<vmem>>, %arg8: memref<32x32xf32, #tpu.memory_space<vmem>>, %arg9: memref<1x32xf32, #tpu.memory_space<vmem>>, %arg10: memref<1x32xf32, #tpu.memory_space<vmem>>, %arg11: memref<1x32xf32, #tpu.memory_space<vmem>>, %arg12: memref<32x32xf32, #tpu.memory_space<vmem>>, %arg13: memref<1x32xf32, #tpu.memory_space<vmem>>, %arg14: memref<1x32xf32, #tpu.memory_space<vmem>>, %arg15: memref<1x32xf32, #tpu.memory_space<vmem>>, %arg16: memref<1x8x32xf32, #tpu.memory_space<vmem>>) attributes {dimension_semantics = [#tpu.dimension_semantics<parallel>, #tpu.dimension_semantics<parallel>], iteration_bounds = array<i64: 2, 1>, scalar_prefetch = 0 : i64, scratch_operands = 0 : i64, tpu.core_type = #tpu.core_type<tc>, window_params = [{transform_indices = @transform_0, window_bounds = array<i64: 1, 8, 32>}, {transform_indices = @transform_1, window_bounds = array<i64: 1, 8, 32>}, {transform_indices = @transform_2, window_bounds = array<i64: 1, 8, 32>}, {transform_indices = @transform_3, window_bounds = array<i64: 1, 8, 32>}, {pipeline_mode = #tpu.pipeline_mode<synchronous>, transform_indices = @transform_4, window_bounds = array<i64: 32, 32>}, {pipeline_mode = #tpu.pipeline_mode<synchronous>, transform_indices = @transform_5, window_bounds = array<i64: 32, 32>}, {pipeline_mode = #tpu.pipeline_mode<synchronous>, transform_indices = @transform_6, window_bounds = array<i64: 32, 32>}, {pipeline_mode = #tpu.pipeline_mode<synchronous>, transform_indices = @transform_7, window_bounds = array<i64: 1, 32>}, {pipeline_mode = #tpu.pipeline_mode<synchronous>, transform_indices = @transform_8, window_bounds = array<i64: 1, 32>}, {pipeline_mode = #tpu.pipeline_mode<synchronous>, transform_indices = @transform_9, window_bounds = array<i64: 1, 32>}, {pipeline_mode = #tpu.pipeline_mode<synchronous>, transform_indices = @transform_10, window_bounds = array<i64: 32, 32>}, {pipeline_mode = #tpu.pipeline_mode<synchronous>, transform_indices = @transform_11, window_bounds = array<i64: 1, 32>}, {pipeline_mode = #tpu.pipeline_mode<synchronous>, transform_indices = @transform_12, window_bounds = array<i64: 1, 32>}, {pipeline_mode = #tpu.pipeline_mode<synchronous>, transform_indices = @transform_13, window_bounds = array<i64: 1, 32>}, {transform_indices = @transform_14, window_bounds = array<i64: 1, 8, 32>}]} {
    %c0 = arith.constant 0 : index
    %c0_0 = arith.constant 0 : index
    %c0_1 = arith.constant 0 : index
    %0 = vector.load %arg2[%c0, %c0_0, %c0_1] : memref<1x8x32xf32, #tpu.memory_space<vmem>>, vector<1x8x32xf32>
    %1 = vector.shape_cast %0 : vector<1x8x32xf32> to vector<8x32xf32>
    %c0_2 = arith.constant 0 : index
    %c0_3 = arith.constant 0 : index
    %2 = vector.load %arg6[%c0_2, %c0_3] : memref<32x32xf32, #tpu.memory_space<vmem>>, vector<32x32xf32>
    %cst = arith.constant dense<0.000000e+00> : vector<8x32xf32>
    %3 = tpu.matmul %1, %2, %cst {dimension_numbers = #tpu.dot_dimension_numbers<[1], [0], [0], [1], [0, 0, 1, 1], [], []>} : vector<8x32xf32>, vector<32x32xf32>, vector<8x32xf32> -> vector<8x32xf32>
    %c0_4 = arith.constant 0 : index
    %c0_5 = arith.constant 0 : index
    %4 = vector.load %arg9[%c0_4, %c0_5] : memref<1x32xf32, #tpu.memory_space<vmem>>, vector<1x32xf32>
    %5 = vector.broadcast %4 : vector<1x32xf32> to vector<8x32xf32>
    %6 = arith.addf %3, %5 : vector<8x32xf32>
    %c0_6 = arith.constant 0 : index
    %c0_7 = arith.constant 0 : index
    %c0_8 = arith.constant 0 : index
    %7 = vector.load %arg3[%c0_6, %c0_7, %c0_8] : memref<1x8x32xf32, #tpu.memory_space<vmem>>, vector<1x8x32xf32>
    %8 = vector.shape_cast %7 : vector<1x8x32xf32> to vector<8x32xf32>
    %c0_9 = arith.constant 0 : index
    %c0_10 = arith.constant 0 : index
    %c0_11 = arith.constant 0 : index
    %9 = vector.load %arg4[%c0_9, %c0_10, %c0_11] : memref<1x8x32xf32, #tpu.memory_space<vmem>>, vector<1x8x32xf32>
    %10 = vector.shape_cast %9 : vector<1x8x32xf32> to vector<8x32xf32>
    %c0_12 = arith.constant 0 : index
    %c0_13 = arith.constant 0 : index
    %11 = vector.load %arg7[%c0_12, %c0_13] : memref<32x32xf32, #tpu.memory_space<vmem>>, vector<32x32xf32>
    %cst_14 = arith.constant dense<0.000000e+00> : vector<8x32xf32>
    %12 = tpu.matmul %8, %11, %cst_14 {dimension_numbers = #tpu.dot_dimension_numbers<[1], [0], [0], [1], [0, 0, 1, 1], [], []>} : vector<8x32xf32>, vector<32x32xf32>, vector<8x32xf32> -> vector<8x32xf32>
    %c0_15 = arith.constant 0 : index
    %c0_16 = arith.constant 0 : index
    %13 = vector.load %arg10[%c0_15, %c0_16] : memref<1x32xf32, #tpu.memory_space<vmem>>, vector<1x32xf32>
    %14 = vector.broadcast %13 : vector<1x32xf32> to vector<8x32xf32>
    %15 = arith.addf %12, %14 : vector<8x32xf32>
    %c0_17 = arith.constant 0 : index
    %c0_18 = arith.constant 0 : index
    %16 = vector.load %arg8[%c0_17, %c0_18] : memref<32x32xf32, #tpu.memory_space<vmem>>, vector<32x32xf32>
    %cst_19 = arith.constant dense<0.000000e+00> : vector<8x32xf32>
    %17 = tpu.matmul %10, %16, %cst_19 {dimension_numbers = #tpu.dot_dimension_numbers<[1], [0], [0], [1], [0, 0, 1, 1], [], []>} : vector<8x32xf32>, vector<32x32xf32>, vector<8x32xf32> -> vector<8x32xf32>
    %c0_20 = arith.constant 0 : index
    %c0_21 = arith.constant 0 : index
    %18 = vector.load %arg11[%c0_20, %c0_21] : memref<1x32xf32, #tpu.memory_space<vmem>>, vector<1x32xf32>
    %19 = vector.broadcast %18 : vector<1x32xf32> to vector<8x32xf32>
    %20 = arith.addf %17, %19 : vector<8x32xf32>
    %21 = vector.shape_cast %6 : vector<8x32xf32> to vector<1x8x32xf32>
    %22 = vector.shape_cast %15 : vector<8x32xf32> to vector<1x8x32xf32>
    %23 = vector.shape_cast %20 : vector<8x32xf32> to vector<1x8x32xf32>
    %24 = vector.extract_strided_slice %21 {offsets = [0, 0, 0], sizes = [1, 8, 8], strides = [1, 1, 1]} : vector<1x8x32xf32> to vector<1x8x8xf32>
    %25 = vector.extract_strided_slice %22 {offsets = [0, 0, 0], sizes = [1, 8, 8], strides = [1, 1, 1]} : vector<1x8x32xf32> to vector<1x8x8xf32>
    %26 = vector.extract_strided_slice %23 {offsets = [0, 0, 0], sizes = [1, 8, 8], strides = [1, 1, 1]} : vector<1x8x32xf32> to vector<1x8x8xf32>
    %cst_22 = arith.constant dense<0.000000e+00> : vector<1x8x8xf32>
    %27 = tpu.matmul %24, %25, %cst_22 {dimension_numbers = #tpu.dot_dimension_numbers<[2], [2], [1], [1], [0, 0, 0, 1, 1, 1], [0], [0]>} : vector<1x8x8xf32>, vector<1x8x8xf32>, vector<1x8x8xf32> -> vector<1x8x8xf32>
    %cst_23 = arith.constant dense<0xFF800000> : vector<1x8xf32>
    %28 = vector.multi_reduction <maximumf>, %27, %cst_23 [2] : vector<1x8x8xf32> to vector<1x8xf32>
    %29 = vector.shape_cast %28 : vector<1x8xf32> to vector<1x8x1xf32>
    %30 = vector.broadcast %29 : vector<1x8x1xf32> to vector<1x8x8xf32>
    %31 = arith.subf %27, %30 : vector<1x8x8xf32>
    %32 = math.exp %31 : vector<1x8x8xf32>
    %cst_24 = arith.constant dense<0.000000e+00> : vector<1x8xf32>
    %33 = vector.multi_reduction <add>, %32, %cst_24 [2] : vector<1x8x8xf32> to vector<1x8xf32>
    %34 = vector.shape_cast %33 : vector<1x8xf32> to vector<1x8x1xf32>
    %35 = tpu.reciprocal %34 {approx = true} : vector<1x8x1xf32> -> vector<1x8x1xf32>
    %36 = vector.broadcast %35 : vector<1x8x1xf32> to vector<1x8x8xf32>
    %37 = arith.mulf %32, %36 : vector<1x8x8xf32>
    %cst_25 = arith.constant dense<0.000000e+00> : vector<1x8x8xf32>
    %38 = tpu.matmul %37, %26, %cst_25 {dimension_numbers = #tpu.dot_dimension_numbers<[2], [1], [1], [2], [0, 0, 0, 1, 1, 2], [0], [0]>} : vector<1x8x8xf32>, vector<1x8x8xf32>, vector<1x8x8xf32> -> vector<1x8x8xf32>
    %39 = vector.extract_strided_slice %21 {offsets = [0, 0, 8], sizes = [1, 8, 8], strides = [1, 1, 1]} : vector<1x8x32xf32> to vector<1x8x8xf32>
    %40 = vector.extract_strided_slice %22 {offsets = [0, 0, 8], sizes = [1, 8, 8], strides = [1, 1, 1]} : vector<1x8x32xf32> to vector<1x8x8xf32>
    %41 = vector.extract_strided_slice %23 {offsets = [0, 0, 8], sizes = [1, 8, 8], strides = [1, 1, 1]} : vector<1x8x32xf32> to vector<1x8x8xf32>
    %cst_26 = arith.constant dense<0.000000e+00> : vector<1x8x8xf32>
    %42 = tpu.matmul %39, %40, %cst_26 {dimension_numbers = #tpu.dot_dimension_numbers<[2], [2], [1], [1], [0, 0, 0, 1, 1, 1], [0], [0]>} : vector<1x8x8xf32>, vector<1x8x8xf32>, vector<1x8x8xf32> -> vector<1x8x8xf32>
    %cst_27 = arith.constant dense<0xFF800000> : vector<1x8xf32>
    %43 = vector.multi_reduction <maximumf>, %42, %cst_27 [2] : vector<1x8x8xf32> to vector<1x8xf32>
    %44 = vector.shape_cast %43 : vector<1x8xf32> to vector<1x8x1xf32>
    %45 = vector.broadcast %44 : vector<1x8x1xf32> to vector<1x8x8xf32>
    %46 = arith.subf %42, %45 : vector<1x8x8xf32>
    %47 = math.exp %46 : vector<1x8x8xf32>
    %cst_28 = arith.constant dense<0.000000e+00> : vector<1x8xf32>
    %48 = vector.multi_reduction <add>, %47, %cst_28 [2] : vector<1x8x8xf32> to vector<1x8xf32>
    %49 = vector.shape_cast %48 : vector<1x8xf32> to vector<1x8x1xf32>
    %50 = tpu.reciprocal %49 {approx = true} : vector<1x8x1xf32> -> vector<1x8x1xf32>
    %51 = vector.broadcast %50 : vector<1x8x1xf32> to vector<1x8x8xf32>
    %52 = arith.mulf %47, %51 : vector<1x8x8xf32>
    %cst_29 = arith.constant dense<0.000000e+00> : vector<1x8x8xf32>
    %53 = tpu.matmul %52, %41, %cst_29 {dimension_numbers = #tpu.dot_dimension_numbers<[2], [1], [1], [2], [0, 0, 0, 1, 1, 2], [0], [0]>} : vector<1x8x8xf32>, vector<1x8x8xf32>, vector<1x8x8xf32> -> vector<1x8x8xf32>
    %54 = vector.extract_strided_slice %21 {offsets = [0, 0, 16], sizes = [1, 8, 8], strides = [1, 1, 1]} : vector<1x8x32xf32> to vector<1x8x8xf32>
    %55 = vector.extract_strided_slice %22 {offsets = [0, 0, 16], sizes = [1, 8, 8], strides = [1, 1, 1]} : vector<1x8x32xf32> to vector<1x8x8xf32>
    %56 = vector.extract_strided_slice %23 {offsets = [0, 0, 16], sizes = [1, 8, 8], strides = [1, 1, 1]} : vector<1x8x32xf32> to vector<1x8x8xf32>
    %cst_30 = arith.constant dense<0.000000e+00> : vector<1x8x8xf32>
    %57 = tpu.matmul %54, %55, %cst_30 {dimension_numbers = #tpu.dot_dimension_numbers<[2], [2], [1], [1], [0, 0, 0, 1, 1, 1], [0], [0]>} : vector<1x8x8xf32>, vector<1x8x8xf32>, vector<1x8x8xf32> -> vector<1x8x8xf32>
    %cst_31 = arith.constant dense<0xFF800000> : vector<1x8xf32>
    %58 = vector.multi_reduction <maximumf>, %57, %cst_31 [2] : vector<1x8x8xf32> to vector<1x8xf32>
    %59 = vector.shape_cast %58 : vector<1x8xf32> to vector<1x8x1xf32>
    %60 = vector.broadcast %59 : vector<1x8x1xf32> to vector<1x8x8xf32>
    %61 = arith.subf %57, %60 : vector<1x8x8xf32>
    %62 = math.exp %61 : vector<1x8x8xf32>
    %cst_32 = arith.constant dense<0.000000e+00> : vector<1x8xf32>
    %63 = vector.multi_reduction <add>, %62, %cst_32 [2] : vector<1x8x8xf32> to vector<1x8xf32>
    %64 = vector.shape_cast %63 : vector<1x8xf32> to vector<1x8x1xf32>
    %65 = tpu.reciprocal %64 {approx = true} : vector<1x8x1xf32> -> vector<1x8x1xf32>
    %66 = vector.broadcast %65 : vector<1x8x1xf32> to vector<1x8x8xf32>
    %67 = arith.mulf %62, %66 : vector<1x8x8xf32>
    %cst_33 = arith.constant dense<0.000000e+00> : vector<1x8x8xf32>
    %68 = tpu.matmul %67, %56, %cst_33 {dimension_numbers = #tpu.dot_dimension_numbers<[2], [1], [1], [2], [0, 0, 0, 1, 1, 2], [0], [0]>} : vector<1x8x8xf32>, vector<1x8x8xf32>, vector<1x8x8xf32> -> vector<1x8x8xf32>
    %69 = vector.extract_strided_slice %21 {offsets = [0, 0, 24], sizes = [1, 8, 8], strides = [1, 1, 1]} : vector<1x8x32xf32> to vector<1x8x8xf32>
    %70 = vector.extract_strided_slice %22 {offsets = [0, 0, 24], sizes = [1, 8, 8], strides = [1, 1, 1]} : vector<1x8x32xf32> to vector<1x8x8xf32>
    %71 = vector.extract_strided_slice %23 {offsets = [0, 0, 24], sizes = [1, 8, 8], strides = [1, 1, 1]} : vector<1x8x32xf32> to vector<1x8x8xf32>
    %cst_34 = arith.constant dense<0.000000e+00> : vector<1x8x8xf32>
    %72 = tpu.matmul %69, %70, %cst_34 {dimension_numbers = #tpu.dot_dimension_numbers<[2], [2], [1], [1], [0, 0, 0, 1, 1, 1], [0], [0]>} : vector<1x8x8xf32>, vector<1x8x8xf32>, vector<1x8x8xf32> -> vector<1x8x8xf32>
    %cst_35 = arith.constant dense<0xFF800000> : vector<1x8xf32>
    %73 = vector.multi_reduction <maximumf>, %72, %cst_35 [2] : vector<1x8x8xf32> to vector<1x8xf32>
    %74 = vector.shape_cast %73 : vector<1x8xf32> to vector<1x8x1xf32>
    %75 = vector.broadcast %74 : vector<1x8x1xf32> to vector<1x8x8xf32>
    %76 = arith.subf %72, %75 : vector<1x8x8xf32>
    %77 = math.exp %76 : vector<1x8x8xf32>
    %cst_36 = arith.constant dense<0.000000e+00> : vector<1x8xf32>
    %78 = vector.multi_reduction <add>, %77, %cst_36 [2] : vector<1x8x8xf32> to vector<1x8xf32>
    %79 = vector.shape_cast %78 : vector<1x8xf32> to vector<1x8x1xf32>
    %80 = tpu.reciprocal %79 {approx = true} : vector<1x8x1xf32> -> vector<1x8x1xf32>
    %81 = vector.broadcast %80 : vector<1x8x1xf32> to vector<1x8x8xf32>
    %82 = arith.mulf %77, %81 : vector<1x8x8xf32>
    %cst_37 = arith.constant dense<0.000000e+00> : vector<1x8x8xf32>
    %83 = tpu.matmul %82, %71, %cst_37 {dimension_numbers = #tpu.dot_dimension_numbers<[2], [1], [1], [2], [0, 0, 0, 1, 1, 2], [0], [0]>} : vector<1x8x8xf32>, vector<1x8x8xf32>, vector<1x8x8xf32> -> vector<1x8x8xf32>
    %84 = tpu.concatenate %38, %53, %68, %83 in 2 : vector<1x8x8xf32>, vector<1x8x8xf32>, vector<1x8x8xf32>, vector<1x8x8xf32> -> vector<1x8x32xf32>
    %85 = vector.shape_cast %84 : vector<1x8x32xf32> to vector<8x32xf32>
    %c0_38 = arith.constant 0 : index
    %c0_39 = arith.constant 0 : index
    %86 = vector.load %arg12[%c0_38, %c0_39] : memref<32x32xf32, #tpu.memory_space<vmem>>, vector<32x32xf32>
    %cst_40 = arith.constant dense<0.000000e+00> : vector<8x32xf32>
    %87 = tpu.matmul %85, %86, %cst_40 {dimension_numbers = #tpu.dot_dimension_numbers<[1], [0], [0], [1], [0, 0, 1, 1], [], []>} : vector<8x32xf32>, vector<32x32xf32>, vector<8x32xf32> -> vector<8x32xf32>
    %c0_41 = arith.constant 0 : index
    %c0_42 = arith.constant 0 : index
    %88 = vector.load %arg13[%c0_41, %c0_42] : memref<1x32xf32, #tpu.memory_space<vmem>>, vector<1x32xf32>
    %89 = vector.broadcast %88 : vector<1x32xf32> to vector<8x32xf32>
    %90 = arith.addf %87, %89 : vector<8x32xf32>
    %c0_43 = arith.constant 0 : index
    %c0_44 = arith.constant 0 : index
    %c0_45 = arith.constant 0 : index
    %91 = vector.load %arg5[%c0_43, %c0_44, %c0_45] : memref<1x8x32xf32, #tpu.memory_space<vmem>>, vector<1x8x32xf32>
    %92 = vector.shape_cast %91 : vector<1x8x32xf32> to vector<8x32xf32>
    %93 = arith.addf %92, %90 : vector<8x32xf32>
    %cst_46 = arith.constant dense<0.000000e+00> : vector<8xf32>
    %94 = vector.multi_reduction <add>, %93, %cst_46 [1] : vector<8x32xf32> to vector<8xf32>
    %95 = vector.shape_cast %94 : vector<8xf32> to vector<8x1xf32>
    %cst_47 = arith.constant 3.200000e+01 : f32
    %96 = vector.broadcast %cst_47 : f32 to vector<8x1xf32>
    %97 = arith.divf %95, %96 : vector<8x1xf32>
    %98 = vector.broadcast %97 : vector<8x1xf32> to vector<8x32xf32>
    %99 = arith.subf %93, %98 : vector<8x32xf32>
    %100 = arith.mulf %99, %99 : vector<8x32xf32>
    %cst_48 = arith.constant dense<0.000000e+00> : vector<8xf32>
    %101 = vector.multi_reduction <add>, %100, %cst_48 [1] : vector<8x32xf32> to vector<8xf32>
    %102 = vector.shape_cast %101 : vector<8xf32> to vector<8x1xf32>
    %cst_49 = arith.constant 3.200000e+01 : f32
    %103 = vector.broadcast %cst_49 : f32 to vector<8x1xf32>
    %104 = arith.divf %102, %103 : vector<8x1xf32>
    %cst_50 = arith.constant 9.99999974E-6 : f32
    %105 = vector.broadcast %cst_50 : f32 to vector<8x1xf32>
    %106 = arith.addf %104, %105 : vector<8x1xf32>
    %107 = math.rsqrt %106 : vector<8x1xf32>
    %108 = vector.broadcast %107 : vector<8x1xf32> to vector<8x32xf32>
    %109 = arith.mulf %99, %108 : vector<8x32xf32>
    %c0_51 = arith.constant 0 : index
    %c0_52 = arith.constant 0 : index
    %110 = vector.load %arg14[%c0_51, %c0_52] : memref<1x32xf32, #tpu.memory_space<vmem>>, vector<1x32xf32>
    %111 = vector.broadcast %110 : vector<1x32xf32> to vector<8x32xf32>
    %112 = arith.mulf %109, %111 : vector<8x32xf32>
    %c0_53 = arith.constant 0 : index
    %c0_54 = arith.constant 0 : index
    %113 = vector.load %arg15[%c0_53, %c0_54] : memref<1x32xf32, #tpu.memory_space<vmem>>, vector<1x32xf32>
    %114 = vector.broadcast %113 : vector<1x32xf32> to vector<8x32xf32>
    %115 = arith.addf %112, %114 : vector<8x32xf32>
    %116 = vector.shape_cast %115 : vector<8x32xf32> to vector<1x8x32xf32>
    %c0_55 = arith.constant 0 : index
    %c0_56 = arith.constant 0 : index
    %c0_57 = arith.constant 0 : index
    %117 = vector.load %arg16[%c0_55, %c0_56, %c0_57] : memref<1x8x32xf32, #tpu.memory_space<vmem>>, vector<1x8x32xf32>
    tpu.vector_store %arg16[%c0_55, %c0_56, %c0_57], %116 {strides = array<i32>} : memref<1x8x32xf32, #tpu.memory_space<vmem>>, vector<1x8x32xf32>,
    return
  }
  func.func @transform_0(%arg0: i32, %arg1: i32) -> (i32, i32, i32) {
    %c0_i32 = arith.constant 0 : i32
    %c0_i32_0 = arith.constant 0 : i32
    return %arg0, %arg1, %c0_i32 : i32, i32, i32
  }
  func.func @transform_1(%arg0: i32, %arg1: i32) -> (i32, i32, i32) {
    %c0_i32 = arith.constant 0 : i32
    %c0_i32_0 = arith.constant 0 : i32
    %c0_i32_1 = arith.constant 0 : i32
    return %arg0, %c0_i32, %c0_i32_0 : i32, i32, i32
  }
  func.func @transform_2(%arg0: i32, %arg1: i32) -> (i32, i32, i32) {
    %c0_i32 = arith.constant 0 : i32
    %c0_i32_0 = arith.constant 0 : i32
    %c0_i32_1 = arith.constant 0 : i32
    return %arg0, %c0_i32, %c0_i32_0 : i32, i32, i32
  }
  func.func @transform_3(%arg0: i32, %arg1: i32) -> (i32, i32, i32) {
    %c0_i32 = arith.constant 0 : i32
    %c0_i32_0 = arith.constant 0 : i32
    return %arg0, %arg1, %c0_i32 : i32, i32, i32
  }
  func.func @transform_4(%arg0: i32, %arg1: i32) -> (i32, i32) {
    %c0_i32 = arith.constant 0 : i32
    %c0_i32_0 = arith.constant 0 : i32
    %c0_i32_1 = arith.constant 0 : i32
    return %c0_i32, %c0_i32_0 : i32, i32
  }
  func.func @transform_5(%arg0: i32, %arg1: i32) -> (i32, i32) {
    %c0_i32 = arith.constant 0 : i32
    %c0_i32_0 = arith.constant 0 : i32
    %c0_i32_1 = arith.constant 0 : i32
    return %c0_i32, %c0_i32_0 : i32, i32
  }
  func.func @transform_6(%arg0: i32, %arg1: i32) -> (i32, i32) {
    %c0_i32 = arith.constant 0 : i32
    %c0_i32_0 = arith.constant 0 : i32
    %c0_i32_1 = arith.constant 0 : i32
    return %c0_i32, %c0_i32_0 : i32, i32
  }
  func.func @transform_7(%arg0: i32, %arg1: i32) -> (i32, i32) {
    %c0_i32 = arith.constant 0 : i32
    %c0_i32_0 = arith.constant 0 : i32
    %c0_i32_1 = arith.constant 0 : i32
    return %c0_i32, %c0_i32_0 : i32, i32
  }
  func.func @transform_8(%arg0: i32, %arg1: i32) -> (i32, i32) {
    %c0_i32 = arith.constant 0 : i32
    %c0_i32_0 = arith.constant 0 : i32
    %c0_i32_1 = arith.constant 0 : i32
    return %c0_i32, %c0_i32_0 : i32, i32
  }
  func.func @transform_9(%arg0: i32, %arg1: i32) -> (i32, i32) {
    %c0_i32 = arith.constant 0 : i32
    %c0_i32_0 = arith.constant 0 : i32
    %c0_i32_1 = arith.constant 0 : i32
    return %c0_i32, %c0_i32_0 : i32, i32
  }
  func.func @transform_10(%arg0: i32, %arg1: i32) -> (i32, i32) {
    %c0_i32 = arith.constant 0 : i32
    %c0_i32_0 = arith.constant 0 : i32
    %c0_i32_1 = arith.constant 0 : i32
    return %c0_i32, %c0_i32_0 : i32, i32
  }
  func.func @transform_11(%arg0: i32, %arg1: i32) -> (i32, i32) {
    %c0_i32 = arith.constant 0 : i32
    %c0_i32_0 = arith.constant 0 : i32
    %c0_i32_1 = arith.constant 0 : i32
    return %c0_i32, %c0_i32_0 : i32, i32
  }
  func.func @transform_12(%arg0: i32, %arg1: i32) -> (i32, i32) {
    %c0_i32 = arith.constant 0 : i32
    %c0_i32_0 = arith.constant 0 : i32
    %c0_i32_1 = arith.constant 0 : i32
    return %c0_i32, %c0_i32_0 : i32, i32
  }
  func.func @transform_13(%arg0: i32, %arg1: i32) -> (i32, i32) {
    %c0_i32 = arith.constant 0 : i32
    %c0_i32_0 = arith.constant 0 : i32
    %c0_i32_1 = arith.constant 0 : i32
    return %c0_i32, %c0_i32_0 : i32, i32
  }
  func.func @transform_14(%arg0: i32, %arg1: i32) -> (i32, i32, i32) {
    %c0_i32 = arith.constant 0 : i32
    %c0_i32_0 = arith.constant 0 : i32
    return %arg0, %arg1, %c0_i32 : i32, i32, i32
  }
}

module attributes {stable_mosaic.version = 11 : i64} {
  func.func @_residual_attention_kernel(%arg0: i32, %arg1: i32, %arg2: memref<1x8x32xf32, #tpu.memory_space<vmem>>, %arg3: memref<1x8x32xf32, #tpu.memory_space<vmem>>, %arg4: memref<1x8x32xf32, #tpu.memory_space<vmem>>, %arg5: memref<1x8x32xf32, #tpu.memory_space<vmem>>, %arg6: memref<32x32xf32, #tpu.memory_space<vmem>>, %arg7: memref<32x32xf32, #tpu.memory_space<vmem>>, %arg8: memref<32x32xf32, #tpu.memory_space<vmem>>, %arg9: memref<1x32xf32, #tpu.memory_space<vmem>>, %arg10: memref<1x32xf32, #tpu.memory_space<vmem>>, %arg11: memref<1x32xf32, #tpu.memory_space<vmem>>, %arg12: memref<32x32xf32, #tpu.memory_space<vmem>>, %arg13: memref<1x32xf32, #tpu.memory_space<vmem>>, %arg14: memref<1x32xf32, #tpu.memory_space<vmem>>, %arg15: memref<1x32xf32, #tpu.memory_space<vmem>>, %arg16: memref<1x8x32xf32, #tpu.memory_space<vmem>>) attributes {dimension_semantics = [#tpu.dimension_semantics<parallel>, #tpu.dimension_semantics<parallel>], iteration_bounds = array<i64: 2, 1>, scalar_prefetch = 0 : i64, scratch_operands = 0 : i64, tpu.core_type = #tpu.core_type<tc>, window_params = [{transform_indices = @transform_0, window_bounds = array<i64: 1, 8, 32>}, {transform_indices = @transform_1, window_bounds = array<i64: 1, 8, 32>}, {transform_indices = @transform_2, window_bounds = array<i64: 1, 8, 32>}, {transform_indices = @transform_3, window_bounds = array<i64: 1, 8, 32>}, {pipeline_mode = #tpu.pipeline_mode<synchronous>, transform_indices = @transform_4, window_bounds = array<i64: 32, 32>}, {pipeline_mode = #tpu.pipeline_mode<synchronous>, transform_indices = @transform_5, window_bounds = array<i64: 32, 32>}, {pipeline_mode = #tpu.pipeline_mode<synchronous>, transform_indices = @transform_6, window_bounds = array<i64: 32, 32>}, {pipeline_mode = #tpu.pipeline_mode<synchronous>, transform_indices = @transform_7, window_bounds = array<i64: 1, 32>}, {pipeline_mode = #tpu.pipeline_mode<synchronous>, transform_indices = @transform_8, window_bounds = array<i64: 1, 32>}, {pipeline_mode = #tpu.pipeline_mode<synchronous>, transform_indices = @transform_9, window_bounds = array<i64: 1, 32>}, {pipeline_mode = #tpu.pipeline_mode<synchronous>, transform_indices = @transform_10, window_bounds = array<i64: 32, 32>}, {pipeline_mode = #tpu.pipeline_mode<synchronous>, transform_indices = @transform_11, window_bounds = array<i64: 1, 32>}, {pipeline_mode = #tpu.pipeline_mode<synchronous>, transform_indices = @transform_12, window_bounds = array<i64: 1, 32>}, {pipeline_mode = #tpu.pipeline_mode<synchronous>, transform_indices = @transform_13, window_bounds = array<i64: 1, 32>}, {transform_indices = @transform_14, window_bounds = array<i64: 1, 8, 32>}]} {
    %c0 = arith.constant 0 : index
    %c0_0 = arith.constant 0 : index
    %c0_1 = arith.constant 0 : index
    %0 = vector.load %arg2[%c0, %c0_0, %c0_1] : memref<1x8x32xf32, #tpu.memory_space<vmem>>, vector<1x8x32xf32>
    %1 = vector.shape_cast %0 : vector<1x8x32xf32> to vector<8x32xf32>
    %c0_2 = arith.constant 0 : index
    %c0_3 = arith.constant 0 : index
    %2 = vector.load %arg6[%c0_2, %c0_3] : memref<32x32xf32, #tpu.memory_space<vmem>>, vector<32x32xf32>
    %cst = arith.constant dense<0.000000e+00> : vector<8x32xf32>
    %3 = tpu.matmul %1, %2, %cst {dimension_numbers = #tpu.dot_dimension_numbers<[1], [0], [0], [1], [0, 0, 1, 1], [], []>} : vector<8x32xf32>, vector<32x32xf32>, vector<8x32xf32> -> vector<8x32xf32>
    %c0_4 = arith.constant 0 : index
    %c0_5 = arith.constant 0 : index
    %4 = vector.load %arg9[%c0_4, %c0_5] : memref<1x32xf32, #tpu.memory_space<vmem>>, vector<1x32xf32>
    %5 = vector.broadcast %4 : vector<1x32xf32> to vector<8x32xf32>
    %6 = arith.addf %3, %5 : vector<8x32xf32>
    %c0_6 = arith.constant 0 : index
    %c0_7 = arith.constant 0 : index
    %c0_8 = arith.constant 0 : index
    %7 = vector.load %arg3[%c0_6, %c0_7, %c0_8] : memref<1x8x32xf32, #tpu.memory_space<vmem>>, vector<1x8x32xf32>
    %8 = vector.shape_cast %7 : vector<1x8x32xf32> to vector<8x32xf32>
    %c0_9 = arith.constant 0 : index
    %c0_10 = arith.constant 0 : index
    %c0_11 = arith.constant 0 : index
    %9 = vector.load %arg4[%c0_9, %c0_10, %c0_11] : memref<1x8x32xf32, #tpu.memory_space<vmem>>, vector<1x8x32xf32>
    %10 = vector.shape_cast %9 : vector<1x8x32xf32> to vector<8x32xf32>
    %c0_12 = arith.constant 0 : index
    %c0_13 = arith.constant 0 : index
    %11 = vector.load %arg7[%c0_12, %c0_13] : memref<32x32xf32, #tpu.memory_space<vmem>>, vector<32x32xf32>
    %cst_14 = arith.constant dense<0.000000e+00> : vector<8x32xf32>
    %12 = tpu.matmul %8, %11, %cst_14 {dimension_numbers = #tpu.dot_dimension_numbers<[1], [0], [0], [1], [0, 0, 1, 1], [], []>} : vector<8x32xf32>, vector<32x32xf32>, vector<8x32xf32> -> vector<8x32xf32>
    %c0_15 = arith.constant 0 : index
    %c0_16 = arith.constant 0 : index
    %13 = vector.load %arg10[%c0_15, %c0_16] : memref<1x32xf32, #tpu.memory_space<vmem>>, vector<1x32xf32>
    %14 = vector.broadcast %13 : vector<1x32xf32> to vector<8x32xf32>
    %15 = arith.addf %12, %14 : vector<8x32xf32>
    %c0_17 = arith.constant 0 : index
    %c0_18 = arith.constant 0 : index
    %16 = vector.load %arg8[%c0_17, %c0_18] : memref<32x32xf32, #tpu.memory_space<vmem>>, vector<32x32xf32>
    %cst_19 = arith.constant dense<0.000000e+00> : vector<8x32xf32>
    %17 = tpu.matmul %10, %16, %cst_19 {dimension_numbers = #tpu.dot_dimension_numbers<[1], [0], [0], [1], [0, 0, 1, 1], [], []>} : vector<8x32xf32>, vector<32x32xf32>, vector<8x32xf32> -> vector<8x32xf32>
    %c0_20 = arith.constant 0 : index
    %c0_21 = arith.constant 0 : index
    %18 = vector.load %arg11[%c0_20, %c0_21] : memref<1x32xf32, #tpu.memory_space<vmem>>, vector<1x32xf32>
    %19 = vector.broadcast %18 : vector<1x32xf32> to vector<8x32xf32>
    %20 = arith.addf %17, %19 : vector<8x32xf32>
    %21 = vector.shape_cast %6 : vector<8x32xf32> to vector<1x8x32xf32>
    %22 = vector.shape_cast %15 : vector<8x32xf32> to vector<1x8x32xf32>
    %23 = vector.shape_cast %20 : vector<8x32xf32> to vector<1x8x32xf32>
    %24 = vector.extract_strided_slice %21 {offsets = [0, 0, 0], sizes = [1, 8, 8], strides = [1, 1, 1]} : vector<1x8x32xf32> to vector<1x8x8xf32>
    %25 = vector.extract_strided_slice %22 {offsets = [0, 0, 0], sizes = [1, 8, 8], strides = [1, 1, 1]} : vector<1x8x32xf32> to vector<1x8x8xf32>
    %26 = vector.extract_strided_slice %23 {offsets = [0, 0, 0], sizes = [1, 8, 8], strides = [1, 1, 1]} : vector<1x8x32xf32> to vector<1x8x8xf32>
    %cst_22 = arith.constant dense<0.000000e+00> : vector<1x8x8xf32>
    %27 = tpu.matmul %24, %25, %cst_22 {dimension_numbers = #tpu.dot_dimension_numbers<[2], [2], [1], [1], [0, 0, 0, 1, 1, 1], [0], [0]>} : vector<1x8x8xf32>, vector<1x8x8xf32>, vector<1x8x8xf32> -> vector<1x8x8xf32>
    %cst_23 = arith.constant dense<0xFF800000> : vector<1x8xf32>
    %28 = vector.multi_reduction <maximumf>, %27, %cst_23 [2] : vector<1x8x8xf32> to vector<1x8xf32>
    %29 = vector.shape_cast %28 : vector<1x8xf32> to vector<1x8x1xf32>
    %30 = vector.broadcast %29 : vector<1x8x1xf32> to vector<1x8x8xf32>
    %31 = arith.subf %27, %30 : vector<1x8x8xf32>
    %32 = math.exp %31 : vector<1x8x8xf32>
    %cst_24 = arith.constant dense<0.000000e+00> : vector<1x8xf32>
    %33 = vector.multi_reduction <add>, %32, %cst_24 [2] : vector<1x8x8xf32> to vector<1x8xf32>
    %34 = vector.shape_cast %33 : vector<1x8xf32> to vector<1x8x1xf32>
    %35 = tpu.reciprocal %34 {approx = true} : vector<1x8x1xf32> -> vector<1x8x1xf32>
    %36 = vector.broadcast %35 : vector<1x8x1xf32> to vector<1x8x8xf32>
    %37 = arith.mulf %32, %36 : vector<1x8x8xf32>
    %cst_25 = arith.constant dense<0.000000e+00> : vector<1x8x8xf32>
    %38 = tpu.matmul %37, %26, %cst_25 {dimension_numbers = #tpu.dot_dimension_numbers<[2], [1], [1], [2], [0, 0, 0, 1, 1, 2], [0], [0]>} : vector<1x8x8xf32>, vector<1x8x8xf32>, vector<1x8x8xf32> -> vector<1x8x8xf32>
    %39 = vector.extract_strided_slice %21 {offsets = [0, 0, 8], sizes = [1, 8, 8], strides = [1, 1, 1]} : vector<1x8x32xf32> to vector<1x8x8xf32>
    %40 = vector.extract_strided_slice %22 {offsets = [0, 0, 8], sizes = [1, 8, 8], strides = [1, 1, 1]} : vector<1x8x32xf32> to vector<1x8x8xf32>
    %41 = vector.extract_strided_slice %23 {offsets = [0, 0, 8], sizes = [1, 8, 8], strides = [1, 1, 1]} : vector<1x8x32xf32> to vector<1x8x8xf32>
    %cst_26 = arith.constant dense<0.000000e+00> : vector<1x8x8xf32>
    %42 = tpu.matmul %39, %40, %cst_26 {dimension_numbers = #tpu.dot_dimension_numbers<[2], [2], [1], [1], [0, 0, 0, 1, 1, 1], [0], [0]>} : vector<1x8x8xf32>, vector<1x8x8xf32>, vector<1x8x8xf32> -> vector<1x8x8xf32>
    %cst_27 = arith.constant dense<0xFF800000> : vector<1x8xf32>
    %43 = vector.multi_reduction <maximumf>, %42, %cst_27 [2] : vector<1x8x8xf32> to vector<1x8xf32>
    %44 = vector.shape_cast %43 : vector<1x8xf32> to vector<1x8x1xf32>
    %45 = vector.broadcast %44 : vector<1x8x1xf32> to vector<1x8x8xf32>
    %46 = arith.subf %42, %45 : vector<1x8x8xf32>
    %47 = math.exp %46 : vector<1x8x8xf32>
    %cst_28 = arith.constant dense<0.000000e+00> : vector<1x8xf32>
    %48 = vector.multi_reduction <add>, %47, %cst_28 [2] : vector<1x8x8xf32> to vector<1x8xf32>
    %49 = vector.shape_cast %48 : vector<1x8xf32> to vector<1x8x1xf32>
    %50 = tpu.reciprocal %49 {approx = true} : vector<1x8x1xf32> -> vector<1x8x1xf32>
    %51 = vector.broadcast %50 : vector<1x8x1xf32> to vector<1x8x8xf32>
    %52 = arith.mulf %47, %51 : vector<1x8x8xf32>
    %cst_29 = arith.constant dense<0.000000e+00> : vector<1x8x8xf32>
    %53 = tpu.matmul %52, %41, %cst_29 {dimension_numbers = #tpu.dot_dimension_numbers<[2], [1], [1], [2], [0, 0, 0, 1, 1, 2], [0], [0]>} : vector<1x8x8xf32>, vector<1x8x8xf32>, vector<1x8x8xf32> -> vector<1x8x8xf32>
    %54 = vector.extract_strided_slice %21 {offsets = [0, 0, 16], sizes = [1, 8, 8], strides = [1, 1, 1]} : vector<1x8x32xf32> to vector<1x8x8xf32>
    %55 = vector.extract_strided_slice %22 {offsets = [0, 0, 16], sizes = [1, 8, 8], strides = [1, 1, 1]} : vector<1x8x32xf32> to vector<1x8x8xf32>
    %56 = vector.extract_strided_slice %23 {offsets = [0, 0, 16], sizes = [1, 8, 8], strides = [1, 1, 1]} : vector<1x8x32xf32> to vector<1x8x8xf32>
    %cst_30 = arith.constant dense<0.000000e+00> : vector<1x8x8xf32>
    %57 = tpu.matmul %54, %55, %cst_30 {dimension_numbers = #tpu.dot_dimension_numbers<[2], [2], [1], [1], [0, 0, 0, 1, 1, 1], [0], [0]>} : vector<1x8x8xf32>, vector<1x8x8xf32>, vector<1x8x8xf32> -> vector<1x8x8xf32>
    %cst_31 = arith.constant dense<0xFF800000> : vector<1x8xf32>
    %58 = vector.multi_reduction <maximumf>, %57, %cst_31 [2] : vector<1x8x8xf32> to vector<1x8xf32>
    %59 = vector.shape_cast %58 : vector<1x8xf32> to vector<1x8x1xf32>
    %60 = vector.broadcast %59 : vector<1x8x1xf32> to vector<1x8x8xf32>
    %61 = arith.subf %57, %60 : vector<1x8x8xf32>
    %62 = math.exp %61 : vector<1x8x8xf32>
    %cst_32 = arith.constant dense<0.000000e+00> : vector<1x8xf32>
    %63 = vector.multi_reduction <add>, %62, %cst_32 [2] : vector<1x8x8xf32> to vector<1x8xf32>
    %64 = vector.shape_cast %63 : vector<1x8xf32> to vector<1x8x1xf32>
    %65 = tpu.reciprocal %64 {approx = true} : vector<1x8x1xf32> -> vector<1x8x1xf32>
    %66 = vector.broadcast %65 : vector<1x8x1xf32> to vector<1x8x8xf32>
    %67 = arith.mulf %62, %66 : vector<1x8x8xf32>
    %cst_33 = arith.constant dense<0.000000e+00> : vector<1x8x8xf32>
    %68 = tpu.matmul %67, %56, %cst_33 {dimension_numbers = #tpu.dot_dimension_numbers<[2], [1], [1], [2], [0, 0, 0, 1, 1, 2], [0], [0]>} : vector<1x8x8xf32>, vector<1x8x8xf32>, vector<1x8x8xf32> -> vector<1x8x8xf32>
    %69 = vector.extract_strided_slice %21 {offsets = [0, 0, 24], sizes = [1, 8, 8], strides = [1, 1, 1]} : vector<1x8x32xf32> to vector<1x8x8xf32>
    %70 = vector.extract_strided_slice %22 {offsets = [0, 0, 24], sizes = [1, 8, 8], strides = [1, 1, 1]} : vector<1x8x32xf32> to vector<1x8x8xf32>
    %71 = vector.extract_strided_slice %23 {offsets = [0, 0, 24], sizes = [1, 8, 8], strides = [1, 1, 1]} : vector<1x8x32xf32> to vector<1x8x8xf32>
    %cst_34 = arith.constant dense<0.000000e+00> : vector<1x8x8xf32>
    %72 = tpu.matmul %69, %70, %cst_34 {dimension_numbers = #tpu.dot_dimension_numbers<[2], [2], [1], [1], [0, 0, 0, 1, 1, 1], [0], [0]>} : vector<1x8x8xf32>, vector<1x8x8xf32>, vector<1x8x8xf32> -> vector<1x8x8xf32>
    %cst_35 = arith.constant dense<0xFF800000> : vector<1x8xf32>
    %73 = vector.multi_reduction <maximumf>, %72, %cst_35 [2] : vector<1x8x8xf32> to vector<1x8xf32>
    %74 = vector.shape_cast %73 : vector<1x8xf32> to vector<1x8x1xf32>
    %75 = vector.broadcast %74 : vector<1x8x1xf32> to vector<1x8x8xf32>
    %76 = arith.subf %72, %75 : vector<1x8x8xf32>
    %77 = math.exp %76 : vector<1x8x8xf32>
    %cst_36 = arith.constant dense<0.000000e+00> : vector<1x8xf32>
    %78 = vector.multi_reduction <add>, %77, %cst_36 [2] : vector<1x8x8xf32> to vector<1x8xf32>
    %79 = vector.shape_cast %78 : vector<1x8xf32> to vector<1x8x1xf32>
    %80 = tpu.reciprocal %79 {approx = true} : vector<1x8x1xf32> -> vector<1x8x1xf32>
    %81 = vector.broadcast %80 : vector<1x8x1xf32> to vector<1x8x8xf32>
    %82 = arith.mulf %77, %81 : vector<1x8x8xf32>
    %cst_37 = arith.constant dense<0.000000e+00> : vector<1x8x8xf32>
    %83 = tpu.matmul %82, %71, %cst_37 {dimension_numbers = #tpu.dot_dimension_numbers<[2], [1], [1], [2], [0, 0, 0, 1, 1, 2], [0], [0]>} : vector<1x8x8xf32>, vector<1x8x8xf32>, vector<1x8x8xf32> -> vector<1x8x8xf32>
    %84 = tpu.concatenate %38, %53, %68, %83 in 2 : vector<1x8x8xf32>, vector<1x8x8xf32>, vector<1x8x8xf32>, vector<1x8x8xf32> -> vector<1x8x32xf32>
    %85 = vector.shape_cast %84 : vector<1x8x32xf32> to vector<8x32xf32>
    %c0_38 = arith.constant 0 : index
    %c0_39 = arith.constant 0 : index
    %86 = vector.load %arg12[%c0_38, %c0_39] : memref<32x32xf32, #tpu.memory_space<vmem>>, vector<32x32xf32>
    %cst_40 = arith.constant dense<0.000000e+00> : vector<8x32xf32>
    %87 = tpu.matmul %85, %86, %cst_40 {dimension_numbers = #tpu.dot_dimension_numbers<[1], [0], [0], [1], [0, 0, 1, 1], [], []>} : vector<8x32xf32>, vector<32x32xf32>, vector<8x32xf32> -> vector<8x32xf32>
    %c0_41 = arith.constant 0 : index
    %c0_42 = arith.constant 0 : index
    %88 = vector.load %arg13[%c0_41, %c0_42] : memref<1x32xf32, #tpu.memory_space<vmem>>, vector<1x32xf32>
    %89 = vector.broadcast %88 : vector<1x32xf32> to vector<8x32xf32>
    %90 = arith.addf %87, %89 : vector<8x32xf32>
    %c0_43 = arith.constant 0 : index
    %c0_44 = arith.constant 0 : index
    %c0_45 = arith.constant 0 : index
    %91 = vector.load %arg5[%c0_43, %c0_44, %c0_45] : memref<1x8x32xf32, #tpu.memory_space<vmem>>, vector<1x8x32xf32>
    %92 = vector.shape_cast %91 : vector<1x8x32xf32> to vector<8x32xf32>
    %93 = arith.addf %92, %90 : vector<8x32xf32>
    %cst_46 = arith.constant dense<0.000000e+00> : vector<8xf32>
    %94 = vector.multi_reduction <add>, %93, %cst_46 [1] : vector<8x32xf32> to vector<8xf32>
    %95 = vector.shape_cast %94 : vector<8xf32> to vector<8x1xf32>
    %cst_47 = arith.constant 3.200000e+01 : f32
    %96 = vector.broadcast %cst_47 : f32 to vector<8x1xf32>
    %97 = arith.divf %95, %96 : vector<8x1xf32>
    %98 = vector.broadcast %97 : vector<8x1xf32> to vector<8x32xf32>
    %99 = arith.subf %93, %98 : vector<8x32xf32>
    %100 = arith.mulf %99, %99 : vector<8x32xf32>
    %cst_48 = arith.constant dense<0.000000e+00> : vector<8xf32>
    %101 = vector.multi_reduction <add>, %100, %cst_48 [1] : vector<8x32xf32> to vector<8xf32>
    %102 = vector.shape_cast %101 : vector<8xf32> to vector<8x1xf32>
    %cst_49 = arith.constant 3.200000e+01 : f32
    %103 = vector.broadcast %cst_49 : f32 to vector<8x1xf32>
    %104 = arith.divf %102, %103 : vector<8x1xf32>
    %cst_50 = arith.constant 9.99999974E-6 : f32
    %105 = vector.broadcast %cst_50 : f32 to vector<8x1xf32>
    %106 = arith.addf %104, %105 : vector<8x1xf32>
    %107 = math.rsqrt %106 : vector<8x1xf32>
    %108 = vector.broadcast %107 : vector<8x1xf32> to vector<8x32xf32>
    %109 = arith.mulf %99, %108 : vector<8x32xf32>
    %c0_51 = arith.constant 0 : index
    %c0_52 = arith.constant 0 : index
    %110 = vector.load %arg14[%c0_51, %c0_52] : memref<1x32xf32, #tpu.memory_space<vmem>>, vector<1x32xf32>
    %111 = vector.broadcast %110 : vector<1x32xf32> to vector<8x32xf32>
    %112 = arith.mulf %109, %111 : vector<8x32xf32>
    %c0_53 = arith.constant 0 : index
    %c0_54 = arith.constant 0 : index
    %113 = vector.load %arg15[%c0_53, %c0_54] : memref<1x32xf32, #tpu.memory_space<vmem>>, vector<1x32xf32>
    %114 = vector.broadcast %113 : vector<1x32xf32> to vector<8x32xf32>
    %115 = arith.addf %112, %114 : vector<8x32xf32>
    %116 = vector.shape_cast %115 : vector<8x32xf32> to vector<1x8x32xf32>
    %c0_55 = arith.constant 0 : index
    %c0_56 = arith.constant 0 : index
    %c0_57 = arith.constant 0 : index
    %117 = vector.load %arg16[%c0_55, %c0_56, %c0_57] : memref<1x8x32xf32, #tpu.memory_space<vmem>>, vector<1x8x32xf32>
    tpu.vector_store %arg16[%c0_55, %c0_56, %c0_57], %116 {strides = array<i32>} : memref<1x8x32xf32, #tpu.memory_space<vmem>>, vector<1x8x32xf32>,
    return
  }
  func.func @transform_0(%arg0: i32, %arg1: i32) -> (i32, i32, i32) {
    %c0_i32 = arith.constant 0 : i32
    %c0_i32_0 = arith.constant 0 : i32
    return %arg0, %arg1, %c0_i32 : i32, i32, i32
  }
  func.func @transform_1(%arg0: i32, %arg1: i32) -> (i32, i32, i32) {
    %c0_i32 = arith.constant 0 : i32
    %c0_i32_0 = arith.constant 0 : i32
    %c0_i32_1 = arith.constant 0 : i32
    return %arg0, %c0_i32, %c0_i32_0 : i32, i32, i32
  }
  func.func @transform_2(%arg0: i32, %arg1: i32) -> (i32, i32, i32) {
    %c0_i32 = arith.constant 0 : i32
    %c0_i32_0 = arith.constant 0 : i32
    %c0_i32_1 = arith.constant 0 : i32
    return %arg0, %c0_i32, %c0_i32_0 : i32, i32, i32
  }
  func.func @transform_3(%arg0: i32, %arg1: i32) -> (i32, i32, i32) {
    %c0_i32 = arith.constant 0 : i32
    %c0_i32_0 = arith.constant 0 : i32
    return %arg0, %arg1, %c0_i32 : i32, i32, i32
  }
  func.func @transform_4(%arg0: i32, %arg1: i32) -> (i32, i32) {
    %c0_i32 = arith.constant 0 : i32
    %c0_i32_0 = arith.constant 0 : i32
    %c0_i32_1 = arith.constant 0 : i32
    return %c0_i32, %c0_i32_0 : i32, i32
  }
  func.func @transform_5(%arg0: i32, %arg1: i32) -> (i32, i32) {
    %c0_i32 = arith.constant 0 : i32
    %c0_i32_0 = arith.constant 0 : i32
    %c0_i32_1 = arith.constant 0 : i32
    return %c0_i32, %c0_i32_0 : i32, i32
  }
  func.func @transform_6(%arg0: i32, %arg1: i32) -> (i32, i32) {
    %c0_i32 = arith.constant 0 : i32
    %c0_i32_0 = arith.constant 0 : i32
    %c0_i32_1 = arith.constant 0 : i32
    return %c0_i32, %c0_i32_0 : i32, i32
  }
  func.func @transform_7(%arg0: i32, %arg1: i32) -> (i32, i32) {
    %c0_i32 = arith.constant 0 : i32
    %c0_i32_0 = arith.constant 0 : i32
    %c0_i32_1 = arith.constant 0 : i32
    return %c0_i32, %c0_i32_0 : i32, i32
  }
  func.func @transform_8(%arg0: i32, %arg1: i32) -> (i32, i32) {
    %c0_i32 = arith.constant 0 : i32
    %c0_i32_0 = arith.constant 0 : i32
    %c0_i32_1 = arith.constant 0 : i32
    return %c0_i32, %c0_i32_0 : i32, i32
  }
  func.func @transform_9(%arg0: i32, %arg1: i32) -> (i32, i32) {
    %c0_i32 = arith.constant 0 : i32
    %c0_i32_0 = arith.constant 0 : i32
    %c0_i32_1 = arith.constant 0 : i32
    return %c0_i32, %c0_i32_0 : i32, i32
  }
  func.func @transform_10(%arg0: i32, %arg1: i32) -> (i32, i32) {
    %c0_i32 = arith.constant 0 : i32
    %c0_i32_0 = arith.constant 0 : i32
    %c0_i32_1 = arith.constant 0 : i32
    return %c0_i32, %c0_i32_0 : i32, i32
  }
  func.func @transform_11(%arg0: i32, %arg1: i32) -> (i32, i32) {
    %c0_i32 = arith.constant 0 : i32
    %c0_i32_0 = arith.constant 0 : i32
    %c0_i32_1 = arith.constant 0 : i32
    return %c0_i32, %c0_i32_0 : i32, i32
  }
  func.func @transform_12(%arg0: i32, %arg1: i32) -> (i32, i32) {
    %c0_i32 = arith.constant 0 : i32
    %c0_i32_0 = arith.constant 0 : i32
    %c0_i32_1 = arith.constant 0 : i32
    return %c0_i32, %c0_i32_0 : i32, i32
  }
  func.func @transform_13(%arg0: i32, %arg1: i32) -> (i32, i32) {
    %c0_i32 = arith.constant 0 : i32
    %c0_i32_0 = arith.constant 0 : i32
    %c0_i32_1 = arith.constant 0 : i32
    return %c0_i32, %c0_i32_0 : i32, i32
  }
  func.func @transform_14(%arg0: i32, %arg1: i32) -> (i32, i32, i32) {
    %c0_i32 = arith.constant 0 : i32
    %c0_i32_0 = arith.constant 0 : i32
    return %arg0, %arg1, %c0_i32 : i32, i32, i32
  }
}

</mosaic_0001>

<bundles_post_ra>
// kernel: tpu_custom_call.1
= control target key start
LH: loop header
LB: loop body
LE: loop exit
PB: predicated region body
PF: predicated region fallthrough
CT: control target
= control target key end

     0   :  { %s3038_s0 = inlined_call_operand.hbm [shape: f32[2,8,32], index: 0, kind: input, shape index: {}]   ;;  %s3039_s1 = inlined_call_operand.hbm [shape: f32[2,8,32], index: 1, kind: input, shape index: {}]   ;;  %s3040_s2 = inlined_call_operand.hbm [shape: f32[2,8,32], index: 2, kind: input, shape index: {}]   ;;  %s3041_s3 = inlined_call_operand.hbm [shape: f32[2,8,32], index: 3, kind: input, shape index: {}]   ;;  %s3042_s4 = inlined_call_operand.hbm [shape: f32[32,32], index: 4, kind: input, shape index: {}]   ;;  %s3043_s5 = inlined_call_operand.hbm [shape: f32[32,32], index: 5, kind: input, shape index: {}]   ;;  %s3044_s6 = inlined_call_operand.hbm [shape: f32[32,32], index: 6, kind: input, shape index: {}]   ;;  %s3045_s7 = inlined_call_operand.vmem [shape: f32[1,32], index: 7, kind: input, shape index: {}]   ;;  %s3046_s8 = inlined_call_operand.vmem [shape: f32[1,32], index: 8, kind: input, shape index: {}]   ;;  %s3047_s9 = inlined_call_operand.vmem [shape: f32[1,32], index: 9, kind: input, shape index: {}]   ;;  %s3048_s10 = inlined_call_operand.hbm [shape: f32[32,32], index: 10, kind: input, shape index: {}]   ;;  %s3049_s11 = inlined_call_operand.vmem [shape: f32[1,32], index: 11, kind: input, shape index: {}]   ;;  %s3050_s12 = inlined_call_operand.vmem [shape: f32[1,32], index: 12, kind: input, shape index: {}]   ;;  %s3051_s13 = inlined_call_operand.vmem [shape: f32[1,32], index: 13, kind: input, shape index: {}]   ;;  %s3052_s14 = inlined_call_operand.hbm [shape: f32[2,8,32], index: 14, kind: output, shape index: {}]  }
   0x1   :  { %3070 = sst [smem:[#allocation31_spill]] %s3039_s1 }
   0x2   :  { %3071 = sst [smem:[#allocation32_spill]] %s3042_s4 }
   0x3   :  { %3072 = sst [smem:[#allocation33_spill]] %s3043_s5 }
   0x4   :  { %3073 = sst [smem:[#allocation34_spill]] %s3044_s6 }
   0x5   :  { %3074 = sst [smem:[#allocation35_spill]] %s3049_s11 }
   0x6   :  { %3075 = sst [smem:[#allocation36_spill]] %s3050_s12 }
   0x7   :  { %3076 = sst [smem:[#allocation37_spill]] %s3051_s13 }
   0x8   :  { %3077 = sst [smem:[#allocation38_spill]] %s3052_s14 }
   0x9   :  { %19 = vsyncpa [#allocation3], 0 }
   0xa   :  { %21 = vsyncpa [#allocation3 + $0x1], 0 }
   0xb   :  { %22 = vsyncpa [#allocation6], 0 }
   0xc   :  { %24 = vsyncpa [#allocation6 + $0x1], 0 }
   0xd   :  { %25 = vsyncpa [#allocation9], 0 }
   0xe   :  { %27 = vsyncpa [#allocation9 + $0x1], 0 }
   0xf   :  { %28 = vsyncpa [#allocation12], 0 }
  0x10   :  { %29 = vsyncpa [#allocation15], 0 }
  0x11   :  { %30 = vsyncpa [#allocation4], 0 }
  0x12   :  { %32 = vsyncpa [#allocation4 + $0x1], 0  ;;  %s2646_s29 = smov 0   ;;  %s2648_s30 = smov 0  }
  0x13   :  { %s2650_s15 = smov 0   ;;  %s2652_s16 = smov 0  }
  0x14   :  { %s2654_s17 = smov 0   ;;  %s2656_s18 = smov 0  }
  0x15 LB: > { %3078 = sst [smem:[#allocation24_spill]] %s2530_s29  ;;  %s2677_s19 = sadd.s32 4294967295, %s2550_s18   ;;  %s2550_s18 = sphi %s2656_s18, %s38_s18   ;;  %s2546_s17 = sphi %s2654_s17, %s3123_s17   ;;  %s2542_s16 = sphi %s2652_s16, %s3122_s16   ;;  %s2538_s15 = sphi %s2650_s15, %s3126_s15   ;;  %s2534_s30 = sphi %s2648_s30, %s3125_s30   ;;  %s2530_s29 = sphi %s2646_s29, %s3124_s29  }
  0x16   : > { %3079 = sst [smem:[#allocation25_spill]] %s2542_s16  ;;  %s1917_s20 = sadd.s32 4294967294, %s2550_s18  }
  0x17   : > { %3080 = sst [smem:[#allocation26_spill]] %s2546_s17  ;;  %p72_p0 = scmp.ne.s32.totalorder %s2534_s30, %s2530_s29 }
  0x18   : > { %p3056_p1 = scmp.eq.s32.totalorder %s2677_s19, 0  ;;  %p388_p2 = scmp.eq.s32.totalorder %s2677_s19, 1 }
  0x19   : > { %p394_p3 = scmp.eq.s32.totalorder %s1917_s20, 1  ;;  %p1918_p5 = scmp.ge.s32.totalorder %s2550_s18, 1 }
  0x1a   : > { %p2686_p4 = por %p3056_p1, %p72_p0  ;;  %p401_p7 = scmp.lt.s32.totalorder %s2550_s18, 3 }
  0x1b   : > { %p2691_p6 = por %p394_p3, %p72_p0  ;;  %s2552_s24 = smov [#allocation10]  }
  0x1c   : > { %p2696_p8 = pnand %p1918_p5, %p401_p7  ;;  %s413_s25 = sshll.u32 %s2552_s24, 4  ;;  %s414_s25 = int_to_ptr.vmem [resolvable:$true] %s413_s25 }
  0x1d   : > { %s3082_s22 = scalar_select %p2691_p6, 1, 0 }
  0x1e   : > { %p2114_p9 = pneg %p2696_p8  ;;  %s2553_s27 = smov [#allocation11]  }
  0x1f   : > { %3083 = sst [smem:[#allocation27_spill]] %s3082_s22  ;;  %s426_s28 = sshll.u32 %s2553_s27, 4  ;;  %s427_s28 = int_to_ptr.vmem [resolvable:$true] %s426_s28 }
  0x20   : > { %p2705_p11 = pnand %p2114_p9, %p3056_p1  ;;  %s2245_s20 = scalar_lea.vmem %s414_s25, 512 }
  0x21   : > { %p2246_p13 = scmp.ne.s32.totalorder %s414_s25, %s2245_s20  ;;  %p2253_p5 = scmp.lt.s32.totalorder %s414_s25, %s414_s25 }
  0x22   : > { %p3066_p12 = pneg %p2705_p11  ;;  %p2254_p7 = scmp.lt.s32.totalorder %s2245_s20, %s2245_s20 }
  0x24   : > { %p2248_p0 = pnand %p2246_p13, %p3066_p12  ;;  %p2255_p10 = por %p2254_p7, %p2253_p5 }
  0x26   : > { %p2249_p3 = pneg %p2248_p0 }
  0x28   : > { %p2256_p9 = pnand %p2255_p10, %p2249_p3 }
  0x2a   : > { %2259 = shalt.err (!%p2256_p9)
}
  0x2b   : > { %s3057_s24 = smov 128   ;;  %s3059_s22 = smov 8  }
  0x2c   : > { %s3086_s4 = sld [smem:[#allocation32_spill]]  ;;  %s2271_s14 = scalar_lea.vmem %s427_s28, 512 }
  0x2d   : > { %p2272_p13 = scmp.ne.s32.totalorder %s427_s28, %s2271_s14  ;;  %p2279_p10 = scmp.lt.s32.totalorder %s427_s28, %s427_s28 }
  0x2e   : > { %p2280_p3 = scmp.lt.s32.totalorder %s2271_s14, %s2271_s14 }
  0x2f   : > { %p2274_p0 = pnand %p2272_p13, %p3066_p12 }
  0x30   : > { %p2281_p7 = por %p2280_p3, %p2279_p10 }
  0x31   : > { %p2275_p5 = pneg %p2274_p0 }
  0x32   : > { %2117 = dma.hbm_to_vmem [thread:$0]  (!%p2705_p11), %s3086_s4, 512, %s414_s25, [#allocation9], %s3057_s24, %s3057_s24, %s3059_s22  }
  0x33   : > { %p2282_p9 = pnand %p2281_p7, %p2275_p5 }
  0x35   : > { %2285 = shalt.err (!%p2282_p9)
}
  0x36   : > { %s3087_s5 = sld [smem:[#allocation33_spill]]  ;;  %s50_s14 = sadd.s32 1, %s2546_s17 }
  0x37   : > { %s59_s29 = sadd.s32 1, %s2538_s15  ;;  %p52_p13 = scmp.ge.s32.totalorder %s50_s14, 2 }
  0x38   : > { %p66_p0 = scmp.ne.s32.totalorder %s2538_s15, %s2534_s30  ;;  %p67_p5 = scmp.eq.s32.totalorder %s2550_s18, 0 }
  0x39   : > { %p2148_p10 = scmp.lt.s32.totalorder %s2550_s18, 2  ;;  %s3128_s14 = smov (%p52_p13, %s50_s14), 0 }
  0x3a   : > { %3088 = sst [smem:[#allocation28_spill]] %s3128_s14  ;;  %p68_p3 = por %p67_p5, %p66_p0 }
  0x3b   : > { %p2743_p7 = por %p388_p2, %p66_p0  ;;  %s54_s25 = ssub.s32 %s2546_s17, %s3128_s14 }
  0x3c   : > { %2120 = dma.hbm_to_vmem [thread:$0]  (!%p2705_p11), %s3087_s5, 512, %s427_s28, [#allocation12], %s3057_s24, %s3057_s24, %s3059_s22  }
  0x3d   : > { %s3089_s13 = scalar_select %p2743_p7, 1, 0 }
  0x3e   : > { %s3062_s28 = sand.u32 1, %s2538_s15   ;;  %p57_p9 = scmp.eq.s32.totalorder %s54_s25, 0 }
  0x3f   : > { %3090 = sst [smem:[#allocation29_spill]] %s3089_s13  ;;  %s2752_s27 = sshll.u32 %s3062_s28, 3 }
  0x40   : > { %s2755_s20 = sshll.u32 %s2546_s17, 7  ;;  %p2757_p1 = pnand %p2148_p10, %p68_p3 }
  0x41   : > { %s2762_s22 = scalar_select %p57_p9, %s2538_s15, %s59_s29  }
  0x42   : > { %s3067_s4 = sand.u32 1, %s2550_s18   ;;  %s3093_s1 = sld [smem:[#allocation31_spill]] }
  0x43   : > { %3092 = sst [smem:[#allocation30_spill]] %s2762_s22  ;;  %s507_s12 = scalar_lea.vmem [#allocation5], %s2752_s27 }
  0x44   : > { %s514_s28 = sshll.u32 %s507_s12, 4  ;;  %s2772_s17 = scalar_lea.sflag [#allocation6], %s3067_s4  ;;  %s515_s28 = int_to_ptr.vmem [resolvable:$true] %s514_s28 }
  0x45   : > { %p3068_p2 = pneg %p2757_p1  ;;  %s2299_s13 = scalar_lea.vmem %s515_s28, 128 }
  0x46   : > { %p2300_p13 = scmp.ne.s32.totalorder %s515_s28, %s2299_s13  ;;  %s2556_s29 = smov [#allocation5]  }
  0x47   : > { %s2304_s22 = sshll.u32 %s2556_s29, 4  ;;  %s2305_s22 = int_to_ptr.vmem [resolvable:$false] %s2304_s22 }
  0x48   : > { %s512_s25 = scalar_lea.hbm %s3093_s1, %s2755_s20  ;;  %p2302_p0 = pnand %p2300_p13, %p3068_p2 }
  0x49   : > { %s2306_s16 = scalar_lea.vmem %s2305_s22, 256  ;;  %p2307_p10 = scmp.lt.s32.totalorder %s515_s28, %s2305_s22 }
  0x4a   : > { %p2303_p5 = pneg %p2302_p0  ;;  %p2308_p3 = scmp.lt.s32.totalorder %s2306_s16, %s2299_s13 }
  0x4c   : > { %p2309_p9 = por %p2308_p3, %p2307_p10 }
  0x4e   : > { %p2310_p12 = pnand %p2309_p9, %p2303_p5 }
  0x50   : > { %2313 = shalt.err (!%p2310_p12)
}
  0x51   : > { %2133 = dma.hbm_to_vmem [thread:$0]  (!%p2757_p1), %s512_s25, 128, %s515_s28, %s2772_s17  }
  0x52   : > { %s2557_s5 = smov [#allocation13]   ;;  %s2558_s14 = smov [#allocation14]  }
  0x53   : > { %s439_s12 = sshll.u32 %s2557_s5, 4  ;;  %s461_s4 = sshll.u32 %s2558_s14, 4  ;;  %s440_s12 = int_to_ptr.vmem [resolvable:$true] %s439_s12  ;;  %s462_s4 = int_to_ptr.vmem [resolvable:$true] %s461_s4 }
  0x54   : > { %s2325_s1 = scalar_lea.vmem %s440_s12, 512  ;;  %p3094_p0 = pneg %p2705_p11 }
  0x55   : > { %p2326_p13 = scmp.ne.s32.totalorder %s440_s12, %s2325_s1  ;;  %p2333_p10 = scmp.lt.s32.totalorder %s440_s12, %s440_s12 }
  0x56   : > { %p2334_p5 = scmp.lt.s32.totalorder %s2325_s1, %s2325_s1 }
  0x57   : > { %p2328_p2 = pnand %p2326_p13, %p3094_p0 }
  0x58   : > { %p2335_p12 = por %p2334_p5, %p2333_p10 }
  0x59   : > { %p2329_p6 = pneg %p2328_p2 }
  0x5b   : > { %p2336_p3 = pnand %p2335_p12, %p2329_p6 }
  0x5d   : > { %2339 = shalt.err (!%p2336_p3)
}
  0x5e   : > { %s3095_s16 = smov 8   ;;  %s3096_s22 = smov 128  }
  0x5f   : > { %s3097_s6 = sld [smem:[#allocation34_spill]]  ;;  %s2351_s25 = scalar_lea.vmem %s462_s4, 512 }
  0x60   : > { %p2352_p9 = scmp.ne.s32.totalorder %s462_s4, %s2351_s25  ;;  %p3098_p13 = pmov %p3094_p0 }
  0x61   : > { %p2359_p7 = scmp.lt.s32.totalorder %s462_s4, %s462_s4  ;;  %p2360_p10 = scmp.lt.s32.totalorder %s2351_s25, %s2351_s25 }
  0x62   : > { %p2354_p2 = pnand %p2352_p9, %p3098_p13 }
  0x63   : > { %p2361_p6 = por %p2360_p10, %p2359_p7 }
  0x64   : > { %p2355_p0 = pneg %p2354_p2 }
  0x65   : > { %2123 = dma.hbm_to_vmem [thread:$0]  (!%p2705_p11), %s3097_s6, 512, %s440_s12, [#allocation12], %s3096_s22, %s3096_s22, %s3095_s16  }
  0x66   : > { %p2362_p5 = pnand %p2361_p6, %p2355_p0 }
  0x68   : > { %2365 = shalt.err (!%p2362_p5)
}
  0x69   : > { %2126 = dma.hbm_to_vmem [thread:$0]  (!%p2705_p11), %s3048_s10, 512, %s462_s4, [#allocation15], %s3096_s22, %s3096_s22, %s3095_s16  }
  0x6a   : > { %s494_s14 = scalar_lea.hbm %s3038_s0, %s2755_s20  ;;  %s488_s13 = scalar_lea.vmem [#allocation2], %s2752_s27 }
  0x6b   : > { %s496_s28 = sshll.u32 %s488_s13, 4  ;;  %s3099_s25 = sand.u32 1, %s2538_s15   ;;  %s497_s28 = int_to_ptr.vmem [resolvable:$true] %s496_s28 }
  0x6c   : > { %s485_s26 = scalar_lea.sflag [#allocation3], %s3099_s25  ;;  %s2379_s6 = scalar_lea.vmem %s497_s28, 128 }
  0x6d   : > { %p2380_p7 = scmp.ne.s32.totalorder %s497_s28, %s2379_s6  ;;  %p3100_p12 = pneg %p2757_p1 }
  0x6e   : > { %s2559_s1 = smov [#allocation2]  }
  0x6f   : > { %p2382_p3 = pnand %p2380_p7, %p3100_p12  ;;  %s2384_s29 = sshll.u32 %s2559_s1, 4  ;;  %s2385_s29 = int_to_ptr.vmem [resolvable:$false] %s2384_s29 }
  0x70   : > { %s2386_s11 = scalar_lea.vmem %s2385_s29, 256  ;;  %p2387_p11 = scmp.lt.s32.totalorder %s497_s28, %s2385_s29 }
  0x71   : > { %p2383_p9 = pneg %p2382_p3  ;;  %p2388_p13 = scmp.lt.s32.totalorder %s2386_s11, %s2379_s6 }
  0x73   : > { %p2389_p2 = por %p2388_p13, %p2387_p11 }
  0x75   : > { %p2390_p0 = pnand %p2389_p2, %p2383_p9 }
  0x77   : > { %2393 = shalt.err (!%p2390_p0)
}
  0x78   : > { %2130 = dma.hbm_to_vmem [thread:$0]  (!%p2757_p1), %s494_s14, 128, %s497_s28, %s485_s26  }
  0x79   : > { %s530_s22 = scalar_lea.hbm %s3040_s2, %s2755_s20  ;;  %s525_s5 = scalar_lea.vmem [#allocation7], %s2752_s27 }
  0x7a   : > { %s532_s12 = sshll.u32 %s525_s5, 4  ;;  %p3101_p6 = pmov %p3100_p12  ;;  %s533_s12 = int_to_ptr.vmem [resolvable:$true] %s532_s12 }
  0x7b   : > { %s2407_s13 = scalar_lea.vmem %s533_s12, 128  ;;  %s2560_s6 = smov [#allocation7]  }
  0x7c   : > { %p2408_p10 = scmp.ne.s32.totalorder %s533_s12, %s2407_s13  ;;  %s2412_s11 = sshll.u32 %s2560_s6, 4  ;;  %s2413_s11 = int_to_ptr.vmem [resolvable:$false] %s2412_s11 }
  0x7d   : > { %s2414_s25 = scalar_lea.vmem %s2413_s11, 256  ;;  %p2415_p12 = scmp.lt.s32.totalorder %s533_s12, %s2413_s11 }
  0x7e   : > { %p2410_p5 = pnand %p2408_p10, %p3101_p6  ;;  %p2416_p3 = scmp.lt.s32.totalorder %s2414_s25, %s2407_s13 }
  0x80   : > { %p2411_p7 = pneg %p2410_p5  ;;  %p2417_p9 = por %p2416_p3, %p2415_p12 }
  0x82   : > { %p2418_p11 = pnand %p2417_p9, %p2411_p7 }
  0x84   : > { %2421 = shalt.err (!%p2418_p11)
}
  0x85   : > { %2136 = dma.hbm_to_vmem [thread:$0]  (!%p2757_p1), %s530_s22, 128, %s533_s12, %s2772_s17  }
  0x86   : > { %s549_s26 = scalar_lea.hbm %s3041_s3, %s2755_s20  ;;  %s543_s1 = scalar_lea.vmem [#allocation8], %s2752_s27 }
  0x87   : > { %s551_s29 = sshll.u32 %s543_s1, 4  ;;  %s3102_s4 = sand.u32 1, %s2550_s18   ;;  %s552_s29 = int_to_ptr.vmem [resolvable:$true] %s551_s29 }
  0x88   : > { %s540_s16 = scalar_lea.sflag [#allocation9], %s3102_s4  ;;  %s2435_s5 = scalar_lea.vmem %s552_s29, 128 }
  0x89   : > { %p2436_p13 = scmp.ne.s32.totalorder %s552_s29, %s2435_s5  ;;  %p3103_p2 = pmov %p3101_p6 }
  0x8a   : > { %s2561_s13 = smov [#allocation8]  }
  0x8b   : > { %p2438_p0 = pnand %p2436_p13, %p3103_p2  ;;  %s2440_s6 = sshll.u32 %s2561_s13, 4  ;;  %s2441_s6 = int_to_ptr.vmem [resolvable:$false] %s2440_s6 }
  0x8c   : > { %s2442_s11 = scalar_lea.vmem %s2441_s6, 256  ;;  %p2443_p6 = scmp.lt.s32.totalorder %s552_s29, %s2441_s6 }
  0x8d   : > { %p2439_p10 = pneg %p2438_p0  ;;  %p2444_p5 = scmp.lt.s32.totalorder %s2442_s11, %s2435_s5 }
  0x8f   : > { %p2445_p7 = por %p2444_p5, %p2443_p6 }
  0x91   : > { %p2446_p12 = pnand %p2445_p7, %p2439_p10 }
  0x93   : > { %2449 = shalt.err (!%p2446_p12)
}
  0x94   : > { %2139 = dma.hbm_to_vmem [thread:$0]  (!%p2757_p1), %s549_s26, 128, %s552_s29, %s540_s16  }
  0x95   : > { %560 = sbr.rel (%p2696_p8) target bundleno = 2284 (0x8ec), region = 76  ;;  %s2842_s17 = sand.u32 (!%p2696_p8), 1, %s2534_s30  }
  0x96   : > { %s2845_s27 = sshll.u32 (!%p2696_p8), %s2842_s17, 3  ;;  %s563_s20 = scalar_lea.sflag (!%p2696_p8), [#allocation3], %s2842_s17 }
  0x97   : > { %s566_s22 = scalar_lea.vmem (!%p2696_p8), [#allocation2], %s2845_s27 }
  0x9a   : > { %2501 = dma.done.wait (%p2686_p4), %s563_s20, 128  }
  0x9b   : > { %2503 = vsyncadd (%p2686_p4), %s563_s20, 4294967168  ;;  %s571_s23 = sand.u32 1, %s2677_s19   ;;  %s575_s12 = scalar_lea.vmem [#allocation5], %s2845_s27 }
  0x9c   : > { %s572_s24 = scalar_lea.sflag [#allocation6], %s571_s23 }
  0x9d   : > { %2505 = dma.done.wait (%p2686_p4), %s572_s24, 256  }
  0x9e   : > { %2507 = vsyncadd (%p2686_p4), %s572_s24, 4294967040  ;;  %s584_s25 = scalar_lea.vmem [#allocation7], %s2845_s27  ;;  %s590_s14 = scalar_lea.sflag [#allocation9], %s571_s23 }
  0x9f   : > { %s593_s28 = scalar_lea.vmem [#allocation8], %s2845_s27 }
  0xa0   : > { %2509 = dma.done.wait (%p2686_p4), %s590_s14, 128  }
  0xa1   : > { %2511 = vsyncadd (%p2686_p4), %s590_s14, 4294967168  ;;  %p3104_p1 = scmp.eq.s32.totalorder %s2677_s19, 0 }
  0xa3   : > { %2513 = dma.done.wait (%p3104_p1), [#allocation9], 512   ;;  %p3105_p8 = pmov %p3104_p1 }
  0xa4   : > { %p3106_p3 = pmov %p3104_p1 }
  0xa5   : > { %2515 = vsyncadd (%p3105_p8), [#allocation9], 4294966784 }
  0xa6   : > { %2517 = dma.done.wait (%p3106_p3), [#allocation12], 1024   ;;  %p3107_p9 = pmov %p3104_p1 }
  0xa7   : > { %p3108_p11 = pmov %p3104_p1 }
  0xa8   : > { %2519 = vsyncadd (%p3107_p9), [#allocation12], 4294966272 }
  0xa9   : > { %2521 = dma.done.wait (%p3108_p11), [#allocation15], 512   ;;  %p3109_p13 = pmov %p3104_p1 }
  0xaa   : > { %v2562_v0 = vmov 0.0   ;;  %vm2563_vm0 = vmmov 0   ;;  %v760_v1 = vld [vmem:[#allocation11 + $0x18] sm:$0xff]  ;;  %v759_v3 = vld [vmem:[#allocation11 + $0x10] sm:$0xff]  ;;  %v758_v5 = vld [vmem:[#allocation11 + $0x8] sm:$0xff]  ;;  %vm681_vm1 = vcmask 261120  }
  0xab   : > { %2523 = vsyncadd (%p3109_p13), [#allocation15], 4294966784  ;;  %2015 = vmatprep.subr.mxu1 %v2562_v0  ;;  %2004 = vmatprep.subr.mxu0 %v2562_v0  ;;  %v673_v2 = vld [vmem:[#allocation10 + $0x18] sm:$0xff]  ;;  %v672_v4 = vld [vmem:[#allocation10 + $0x10] sm:$0xff]  ;;  %vm925_vm2 = vcmask 64512   ;;  %s2564_s29 = smov 120  }
  0xac   : > { %2023 = vmatprep.mubr.msk.f32.mxu1 %vm2563_vm0, %v2562_v0  ;;  %2012 = vmatprep.mubr.msk.f32.mxu0 %vm2563_vm0, %v2562_v0  ;;  %v671_v6 = vld [vmem:[#allocation10 + $0x8] sm:$0xff]  ;;  %v757_v7 = vld [vmem:[#allocation11] sm:$0xff]  ;;  %v755_v9 = vld [vmem:[%s575_s12] sm:$0xff]  ;;  %s2565_s4 = smov 112   ;;  %s2566_s16 = smov 104   ;;  %vm1595_vm3 = vcmask 130048  }
  0xad   : > { %2016 = vmatpush3.msra.mxu1 %v760_v1  ;;  %2005 = vmatpush3.msra.mxu0 %v673_v2  ;;  %v670_v8 = vld [vmem:[#allocation10] sm:$0xff]  ;;  %v844_v19 = vld [vmem:[#allocation13 + $0x18] sm:$0xff]  ;;  %v843_v20 = vld [vmem:[#allocation13 + $0x10] sm:$0xff]  ;;  %s2567_s6 = smov 8   ;;  %s2568_s11 = smov 16   ;;  %vm1597_vm4 = vcmask 195584  }
  0xae   : > { %2017 = vmatprep.subr.mxu1 %v2562_v0  ;;  %2006 = vmatprep.subr.mxu0 %v2562_v0  ;;  %v669_v10 = vld [vmem:[%s566_s22] sm:$0xff]  ;;  %s2569_s20 = smov 24   ;;  %s3110_s24 = sld [smem:[#allocation35_spill]] }
  0xaf   : > { %2018 = vmatpush3.msra.mxu1 %v759_v3  ;;  %2007 = vmatpush3.msra.mxu0 %v672_v4  ;;  %v1944_v11 = vld [vmem:[%s3046_s8] ss:$0 sm:$0xff]  ;;  %v842_v21 = vld [vmem:[#allocation13 + $0x8] sm:$0xff]  ;;  %s3111_s12 = sld [smem:[#allocation25_spill]]  ;;  %s2570_s23 = smov [#allocation16]  }
  0xb0   : > { %2019 = vmatprep.subr.mxu1 %v2562_v0  ;;  %2008 = vmatprep.subr.mxu0 %v2562_v0  ;;  %v1942_v12 = vld [vmem:[%s3045_s7] ss:$0 sm:$0xff]  ;;  %s3113_s19 = sld [smem:[#allocation36_spill]] }
  0xb1   : > { %2020 = vmatpush3.msra.mxu1 %v758_v5  ;;  %2009 = vmatpush3.msra.mxu0 %v671_v6  ;;  %v841_v22 = vld [vmem:[#allocation13] sm:$0xff]  ;;  %s3114_s1 = sld [smem:[#allocation37_spill]] }
  0xb2   : > { %2021 = vmatprep.subr.mxu1 %v2562_v0  ;;  %2010 = vmatprep.subr.mxu0 %v2562_v0  ;;  %v756_v23 = vld [vmem:[%s584_s25] sm:$0xff]  ;;  %s3112_s25 = sld [smem:[#allocation29_spill]] }
  0xb3   : > { %2022 = vmatpush3.msra.mxu1 %v757_v7  ;;  %2011 = vmatpush3.msra.mxu0 %v670_v8  ;;  %v1946_v32 = vld [vmem:[%s3047_s9] ss:$0 sm:$0xff] }
  0xb4   : > { %2024 = vmatmul.mubr.msk.f32.vlgmr.msra.gmra.mxu1 %vm681_vm1, %v755_v9  ;;  %2013 = vmatmul.mubr.msk.f32.vlgmr.msra.gmra.mxu0 %vm681_vm1, %v669_v10 }
  0xb5   : > { %2037 = vmatprep.subr.mxu1 %v2562_v0  ;;  %2039 = vmatprep.mubr.msk.f32.mxu1 %vm2563_vm0, %v2562_v0 }
  0xb6   : > { %2026 = vmatprep.subr.mxu0 %v2562_v0  ;;  %2034 = vmatprep.mubr.msk.f32.mxu0 %vm2563_vm0, %v2562_v0 }
  0xb7   : > { %2027 = vmatpush3.msra.mxu0 %v844_v19 }
  0xb8   : > { %2028 = vmatprep.subr.mxu0 %v2562_v0  ;;  %p3116_p2 = scmp.ne.s32.totalorder %s3112_s25, 0 }
  0xb9   : > { %2029 = vmatpush3.msra.mxu0 %v843_v20  ;;  %v1602_v20 = vld [vmem:[#allocation14 + $0x18] sm:$0xff] }
  0xba   : > { %2030 = vmatprep.subr.mxu0 %v2562_v0 }
  0xbb   : > { %2031 = vmatpush3.msra.mxu0 %v842_v21  ;;  %v1601_v21 = vld [vmem:[#allocation14 + $0x10] sm:$0xff] }
  0xbc   : > { %2032 = vmatprep.subr.mxu0 %v2562_v0 }
  0xbd   : > { %2033 = vmatpush3.msra.mxu0 %v841_v22  ;;  %v1600_v22 = vld [vmem:[#allocation14 + $0x8] sm:$0xff] }
  0xbe   : > { %2035 = vmatmul.mubr.msk.f32.vlgmr.msra.gmra.mxu0 %vm681_vm1, %v756_v23  ;;  %2057 = vmatprep.subr.mxu0 %v2562_v0  ;;  %v1599_v23 = vld [vmem:[#allocation14] sm:$0xff] }
  0xbf   : > { %2059 = vmatprep.mubr.msk.f32.mxu0 %vm2563_vm0, %v2562_v0 }
 0x174   : > { %v837_v13 = vpop.f32.mrf.mxu1  ;;  %v751_v14 = vpop.f32.mrf.mxu0 }
 0x175   : > { %v838_v15 = vadd.f32 %v1944_v11, %v837_v13  ;;  %v752_v16 = vadd.f32 %v1942_v12, %v751_v14 }
 0x176   : > { %v2025_v17 = vpop.f32.mrf.mxu1  ;;  %v2014_v18 = vpop.f32.mrf.mxu0 }
 0x177   : > { %1088 = vrot.lane.b32.xlu1 %v838_v15, %s2564_s29  ;;  %2038 = vmatpush3.xpose.msk.msra.mxu1 %vm925_vm2, %v838_v15 }
 0x178   : > { %2042 = vmatprep.subr.mxu1 %v2562_v0 }
 0x17a   : > { %2040 = vmatmul.mubr.msk.f32.vlgmr.msra.gmra.mxu1 %vm925_vm2, %v752_v16 }
 0x17b   : > { %1086 = vrot.lane.b32.xlu1 %v752_v16, %s2564_s29  ;;  %2044 = vmatprep.mubr.msk.f32.mxu1 %vm2563_vm0, %v2562_v0 }
 0x17e   : > { %v921_v33 = vpop.f32.mrf.mxu0 }
 0x17f   : > { %1252 = vrot.lane.b32.xlu1 %v752_v16, %s2565_s4  ;;  %v2931_v34 = vadd.f32 %v1946_v32, %v921_v33 }
 0x180   : > { %v2036_v35 = vpop.f32.mrf.mxu0 }
 0x181   : > { %2043 = vmatpush3.msra.mxu1 %v2931_v34  ;;  %v1960_v35 = vld [vmem:[%s3110_s24] ss:$0 sm:$0xff]  ;;  %s2454_s24 = sshll.u32 %s2570_s23, 4  ;;  %s2455_s24 = int_to_ptr.vmem [resolvable:$false] %s2454_s24 }
 0x182   : > { %2047 = vmatprep.subr.mxu1 %v2562_v0 }
 0x183   : > { %1419 = vrot.lane.b32.xlu1 %v838_v15, %s2566_s16 }
 0x187   : > { %1417 = vrot.lane.b32.xlu1 %v752_v16, %s2566_s16 }
 0x1e9   : > { %v1089_v36 = vpop.permute.xlu1 %1088 }
 0x1ed   : > { %v1087_v37 = vpop.permute.xlu1 %1086 }
 0x1f1   : > { %v1253_v38 = vpop.permute.xlu1 %1252 }
 0x1f5   : > { %v1420_v41 = vpop.permute.xlu1 %1419 }
 0x1f9   : > { %v1418_v42 = vpop.permute.xlu1 %1417 }
 0x23a   : > { %v998_v24 = vpop.f32.mrf.mxu1 }
 0x23b   : > { %v1002_v25 = vsel %vm925_vm2, %v998_v24, -inf }
 0x23c   : > { %1003 = vmax.xlane.f32.xlu0 %v1002_v25  ;;  %v2041_v26 = vpop.f32.mrf.mxu1 }
 0x2c5   : > { %v1004_v27 = vpop.xlane.xlu0 %1003 }
 0x2c6   : > { %v1005_v28 = vsub.f32 %v998_v24, %v1004_v27 }
 0x2c8   : > { %v1006_v29 = vmul.f32 1.442695, %v1005_v28 }
 0x2ca   : > { %2216 = vpow2.f32 %v1006_v29 }
 0x2d7   : > { %v2217_v30 = vpop.eup %2216 }
 0x2d8   : > { %v1008_v31 = vsel %vm925_vm2, %v2217_v30, 0.0 }
 0x2d9   : > { %1009 = vadd.xlane.f32.xlu0 %v1008_v31 }
 0x2ef   : > { %1254 = vrot.lane.b32.xlu0 %v838_v15, %s2565_s4 }
 0x362   : > { %v1010_v39 = vpop.xlane.xlu0 %1009 }
 0x363   : > { %2218 = vrcp.f32 %v1010_v39 }
 0x366   : > { %v1255_v40 = vpop.permute.xlu0 %1254 }
 0x367   : > { %2058 = vmatpush3.xpose.msk.msra.mxu0 %vm925_vm2, %v1255_v40 }
 0x368   : > { %2067 = vmatprep.subr.mxu0 %v2562_v0 }
 0x36a   : > { %2060 = vmatmul.mubr.msk.f32.vlgmr.msra.gmra.mxu0 %vm925_vm2, %v1253_v38 }
 0x36b   : > { %2068 = vmatpush3.xpose.msk.msra.mxu0 %vm925_vm2, %v1420_v41  ;;  %2069 = vmatprep.mubr.msk.f32.mxu0 %vm2563_vm0, %v2562_v0 }
 0x36c   : > { %2077 = vmatprep.subr.mxu0 %v2562_v0 }
 0x36e   : > { %2070 = vmatmul.mubr.msk.f32.vlgmr.msra.gmra.mxu0 %vm925_vm2, %v1418_v42 }
 0x36f   : > { %2085 = vmatprep.mubr.msk.f32.mxu0 %vm2563_vm0, %v2562_v0  ;;  %2078 = vmatpush3.msra.mxu0 %v1602_v20 }
 0x370   : > { %v2219_v43 = vpop.eup %2218  ;;  %2079 = vmatprep.subr.mxu0 %v2562_v0 }
 0x371   : > { %v1012_v44 = vmul.f32 %v2219_v43, %v2217_v30  ;;  %2080 = vmatpush3.msra.mxu0 %v1601_v21 }
 0x372   : > { %2081 = vmatprep.subr.mxu0 %v2562_v0 }
 0x373   : > { %2045 = vmatmul.mubr.msk.f32.vlgmr.msra.gmra.mxu1 %vm925_vm2, %v1012_v44  ;;  %2082 = vmatpush3.msra.mxu0 %v1600_v22 }
 0x374   : > { %2048 = vmatpush3.xpose.msk.msra.mxu1 %vm925_vm2, %v1089_v36  ;;  %2049 = vmatprep.mubr.msk.f32.mxu1 %vm2563_vm0, %v2562_v0 }
 0x375   : > { %2052 = vmatprep.subr.mxu1 %v2562_v0  ;;  %2083 = vmatprep.subr.mxu0 %v2562_v0 }
 0x376   : > { %2084 = vmatpush3.msra.mxu0 %v1599_v23 }
 0x377   : > { %2050 = vmatmul.mubr.msk.f32.vlgmr.msra.gmra.mxu1 %vm925_vm2, %v1087_v37  ;;  %v1683_v37 = vld [vmem:[%s593_s28] sm:$0xff] }
 0x378   : > { %2054 = vmatprep.mubr.msk.f32.mxu1 %vm2563_vm0, %v2562_v0 }
 0x42a   : > { %v1326_v45 = vpop.f32.mrf.mxu0 }
 0x42b   : > { %v1330_v46 = vsel %vm925_vm2, %v1326_v45, -inf }
 0x42c   : > { %1331 = vmax.xlane.f32.xlu0 %v1330_v46  ;;  %v2061_v47 = vpop.f32.mrf.mxu0 }
 0x42e   : > { %v1491_v48 = vpop.f32.mrf.mxu0 }
 0x42f   : > { %v1495_v55 = vsel %vm925_vm2, %v1491_v48, -inf }
 0x430   : > { %v2071_v49 = vpop.f32.mrf.mxu0 }
 0x433   : > { %v2955_v50 = vpop.f32.mrf.mxu1 }
 0x435   : > { %v2046_v51 = vpop.f32.mrf.mxu1 }
 0x436   : > { %v1962_v51 = vld [vmem:[%s3113_s19] ss:$0 sm:$0xff] }
 0x437   : > { %v1160_v52 = vpop.f32.mrf.mxu1 }
 0x438   : > { %v1164_v53 = vsel %vm925_vm2, %v1160_v52, -inf }
 0x439   : > { %1165 = vmax.xlane.f32.xlu1 %v1164_v53  ;;  %v2051_v54 = vpop.f32.mrf.mxu1  ;;  %v1963_v53 = vld [vmem:[%s3114_s1] ss:$0 sm:$0xff] }
 0x43d   : > { %1496 = vmax.xlane.f32.xlu1 %v1495_v55 }
 0x4b5   : > { %v1332_v56 = vpop.xlane.xlu0 %1331 }
 0x4b6   : > { %v1333_v57 = vsub.f32 %v1326_v45, %v1332_v56 }
 0x4b8   : > { %v1334_v58 = vmul.f32 1.442695, %v1333_v57 }
 0x4ba   : > { %2220 = vpow2.f32 %v1334_v58 }
 0x4c2   : > { %v1166_v59 = vpop.xlane.xlu1 %1165 }
 0x4c3   : > { %v1167_v4 = vsub.f32 %v1160_v52, %v1166_v59 }
 0x4c5   : > { %v1168_v5 = vmul.f32 1.442695, %v1167_v4 }
 0x4c6   : > { %v1497_v60 = vpop.xlane.xlu1 %1496 }
 0x4c7   : > { %v2221_v61 = vpop.eup %2220  ;;  %v1498_v62 = vsub.f32 %v1491_v48, %v1497_v60 }
 0x4c8   : > { %v1336_v63 = vsel %vm925_vm2, %v2221_v61, 0.0 }
 0x4c9   : > { %v1499_v1 = vmul.f32 1.442695, %v1498_v62  ;;  %1337 = vadd.xlane.f32.xlu0 %v1336_v63 }
 0x4cb   : > { %2222 = vpow2.f32 %v1499_v1 }
 0x4cc   : > { %2224 = vpow2.f32 %v1168_v5 }
 0x4d8   : > { %v2223_v2 = vpop.eup %2222 }
 0x4d9   : > { %v1501_v3 = vsel %vm925_vm2, %v2223_v2, 0.0  ;;  %v2225_v6 = vpop.eup %2224 }
 0x4da   : > { %1502 = vadd.xlane.f32.xlu1 %v1501_v3  ;;  %v1170_v7 = vsel %vm925_vm2, %v2225_v6, 0.0 }
 0x4df   : > { %1176 = vrot.lane.b32.xlu0 %v2931_v34, %s2564_s29  ;;  %s1965_s29 = sshll.u32 %s3111_s12, 7 }
 0x4eb   : > { %1341 = vrot.lane.b32.xlu1 %v2931_v34, %s2565_s4  ;;  %s668_s4 = scalar_lea.vmem [#allocation16], %s2845_s27  ;;  %s2456_s27 = scalar_lea.vmem %s2455_s24, 256 }
 0x50f   : > { %1171 = vadd.xlane.f32.xlu1 %v1170_v7 }
 0x520   : > { %1506 = vrot.lane.b32.xlu1 %v2931_v34, %s2566_s16  ;;  %s1731_s16 = sshll.u32 %s668_s4, 4  ;;  %s1732_s16 = int_to_ptr.vmem [resolvable:$true] %s1731_s16 }
 0x521   : > { %s2450_s22 = scalar_lea.vmem %s1732_s16, 128  ;;  %p2457_p6 = scmp.lt.s32.totalorder %s1732_s16, %s2455_s24 }
 0x522   : > { %p2451_p4 = scmp.ne.s32.totalorder %s1732_s16, %s2450_s22  ;;  %p2458_p5 = scmp.lt.s32.totalorder %s2456_s27, %s2450_s22 }
 0x524   : > { %p2452_p0 = pnand %p2451_p4, %p3116_p2  ;;  %p2459_p7 = por %p2458_p5, %p2457_p6 }
 0x526   : > { %p2453_p10 = pneg %p2452_p0 }
 0x528   : > { %p2460_p12 = pnand %p2459_p7, %p2453_p10 }
 0x552   : > { %v1338_v8 = vpop.xlane.xlu0 %1337 }
 0x556   : > { %v1177_v9 = vpop.permute.xlu0 %1176 }
 0x557   : > { %2053 = vmatpush3.msra.mxu1 %v1177_v9 }
 0x558   : > { %2062 = vmatprep.subr.mxu1 %v2562_v0 }
 0x563   : > { %v1503_v10 = vpop.xlane.xlu1 %1502 }
 0x567   : > { %v1342_v11 = vpop.permute.xlu1 %1341 }
 0x598   : > { %v1172_v12 = vpop.xlane.xlu1 %1171 }
 0x599   : > { %2226 = vrcp.f32 %v1172_v12 }
 0x59a   : > { %2228 = vrcp.f32 %v1338_v8 }
 0x59b   : > { %2230 = vrcp.f32 %v1503_v10 }
 0x59c   : > { %v1507_v18 = vpop.permute.xlu1 %1506 }
 0x5a6   : > { %v2227_v13 = vpop.eup %2226 }
 0x5a7   : > { %v1174_v14 = vmul.f32 %v2227_v13, %v2225_v6  ;;  %v2229_v15 = vpop.eup %2228 }
 0x5a8   : > { %v1340_v16 = vmul.f32 %v2229_v15, %v2221_v61  ;;  %v2231_v17 = vpop.eup %2230 }
 0x5a9   : > { %2055 = vmatmul.mubr.msk.f32.vlgmr.msra.gmra.mxu1 %vm925_vm2, %v1174_v14  ;;  %v1505_v19 = vmul.f32 %v2231_v17, %v2223_v2 }
 0x5aa   : > { %2063 = vmatpush3.msra.mxu1 %v1342_v11  ;;  %2064 = vmatprep.mubr.msk.f32.mxu1 %vm2563_vm0, %v2562_v0 }
 0x5ab   : > { %2072 = vmatprep.subr.mxu1 %v2562_v0 }
 0x5ad   : > { %2065 = vmatmul.mubr.msk.f32.vlgmr.msra.gmra.mxu1 %vm925_vm2, %v1340_v16 }
 0x5ae   : > { %2073 = vmatpush3.msra.mxu1 %v1507_v18  ;;  %2074 = vmatprep.mubr.msk.f32.mxu1 %vm2563_vm0, %v2562_v0 }
 0x5b1   : > { %2075 = vmatmul.mubr.msk.f32.vlgmr.msra.gmra.mxu1 %vm925_vm2, %v1505_v19 }
 0x669   : > { %v1248_v24 = vpop.f32.mrf.mxu1 }
 0x66a   : > { %1583 = vrot.lane.b32.xlu0 %v1248_v24, %s2567_s6  ;;  %s3115_s6 = sld [smem:[#allocation38_spill]] }
 0x66b   : > { %v2056_v25 = vpop.f32.mrf.mxu1 }
 0x66d   : > { %v1413_v26 = vpop.f32.mrf.mxu1 }
 0x66e   : > { %1587 = vrot.lane.b32.xlu1 %v1413_v26, %s2568_s11 }
 0x66f   : > { %v2066_v27 = vpop.f32.mrf.mxu1 }
 0x670   : > { %s1729_s11 = scalar_lea.hbm %s3115_s6, %s1965_s29 }
 0x671   : > { %v1578_v28 = vpop.f32.mrf.mxu1 }
 0x672   : > { %1591 = vrot.lane.b32.xlu0 %v1578_v28, %s2569_s20  ;;  %s1717_s20 = scalar_lea.sflag [#allocation4], %s2842_s17 }
 0x673   : > { %v2076_v29 = vpop.f32.mrf.mxu1 }
 0x6dc   : > { %v1584_v30 = vpop.permute.xlu0 %1583 }
 0x6dd   : > { %v1594_v0 = vsel %vm925_vm2, %v2955_v50, %v1584_v30 }
 0x6e0   : > { %v1588_v31 = vpop.permute.xlu1 %1587 }
 0x6e1   : > { %v1596_v32 = vsel %vm1595_vm3, %v1594_v0, %v1588_v31 }
 0x6e4   : > { %v1592_v33 = vpop.permute.xlu0 %1591 }
 0x6e5   : > { %v1598_v34 = vsel %vm1597_vm4, %v1596_v32, %v1592_v33 }
 0x6e6   : > { %2086 = vmatmul.mubr.msk.f32.vlgmr.msra.gmra.mxu0 %vm681_vm1, %v1598_v34 }
 0x7a6   : > { %v1679_v36 = vpop.f32.mrf.mxu0 }
 0x7a7   : > { %v1680_v38 = vadd.f32 %v1960_v35, %v1679_v36 }
 0x7a8   : > { %v2087_v39 = vpop.f32.mrf.mxu0 }
 0x7a9   : > { %v1684_v40 = vadd.f32 %v1683_v37, %v1680_v38 }
 0x7ab   : > { %v1685_v41 = vsel %vm681_vm1, %v1684_v40, 0.0 }
 0x7ac   : > { %1686 = vadd.xlane.f32.xlu1 %v1685_v41 }
 0x835   : > { %v1687_v42 = vpop.xlane.xlu1 %1686 }
 0x836   : > { %v1689_v43 = vmul.f32 0.03125, %v1687_v42 }
 0x838   : > { %v1690_v44 = vsub.f32 %v1684_v40, %v1689_v43 }
 0x83a   : > { %v1691_v45 = vmul.f32 %v1690_v44, %v1690_v44 }
 0x83c   : > { %v1692_v46 = vsel %vm681_vm1, %v1691_v45, 0.0 }
 0x83d   : > { %1693 = vadd.xlane.f32.xlu0 %v1692_v46 }
 0x8c6   : > { %v1694_v47 = vpop.xlane.xlu0 %1693 }
 0x8c7   : > { %v1695_v48 = vmul.f32 0.03125, %v1694_v47 }
 0x8c9   : > { %v1696_v49 = vadd.f32 1e-05, %v1695_v48 }
 0x8cb   : > { %2232 = vrsqrt.f32 %v1696_v49 }
 0x8d8   : > { %v2233_v50 = vpop.eup %2232 }
 0x8d9   : > { %v1698_v52 = vmul.f32 %v2233_v50, %v1690_v44 }
 0x8db   : > { %v1706_v54 = vmul.f32 %v1962_v51, %v1698_v52 }
 0x8dd   : > { %v1714_v55 = vadd.f32 %v1963_v53, %v1706_v54 }
 0x8df   : > { %1715 = vst.msk [vmem:[%s668_s4] sm:$0xff] %vm681_vm1, %v1714_v55 }
 0x8e0   : > { %2463 = shalt.err (!%p2460_p12)
}
 0x8e1   : > { %s2464_s12 = scalar_lea.hbm %s1729_s11, 128  ;;  %s2468_s28 = scalar_lea.hbm %s3115_s6, 256 }
 0x8e2   : > { %p2465_p1 = scmp.ne.s32.totalorder %s1729_s11, %s2464_s12  ;;  %p2469_p9 = scmp.lt.s32.totalorder %s1729_s11, %s3115_s6 }
 0x8e3   : > { %p2470_p11 = scmp.lt.s32.totalorder %s2468_s28, %s2464_s12 }
 0x8e4   : > { %p2466_p8 = pnand %p2465_p1, %p3116_p2 }
 0x8e5   : > { %p2471_p13 = por %p2470_p11, %p2469_p9 }
 0x8e6   : > { %p2467_p3 = pneg %p2466_p8 }
 0x8e8   : > { %p2472_p4 = pnand %p2471_p13, %p2467_p3 }
 0x8ea   : > { %2475 = shalt.err (!%p2472_p4)
}
 0x8eb   : > { %2112 = dma.vmem_to_hbm [thread:$0]  (%p3116_p2), %s1732_s16, 128, %s1729_s11, %s1717_s20  }
 0x8ec PF: > { %s3117_s26 = sld [smem:[#allocation24_spill]]  ;;  %p3120_p10 = scmp.ge.s32.totalorder %s2550_s18, 2 }
 0x8ed   : > { %s3118_s1 = sld [smem:[#allocation27_spill]] }
 0x8f2   : > { %s1743_s29 = sand.u32 1, %s3117_s26  }
 0x8f3   : > { %p3119_p0 = scmp.ne.s32.totalorder %s3118_s1, 0  ;;  %s1744_s4 = scalar_lea.sflag [#allocation4], %s1743_s29 }
 0x8f5   : > { %p2141_p6 = pnand %p3120_p10, %p3119_p0 }
 0x8f7   : > { %p2142_p5 = pneg %p2141_p6 }
 0x8f9   : > { %2525 = dma.done.wait (%p2142_p5), %s1744_s4, 128  }
 0x8fa   : > { %2527 = vsyncadd (%p2142_p5), %s1744_s4, 4294967168  ;;  %s38_s18 = sadd.s32 1, %s2550_s18   ;;  %s3121_s5 = sld [smem:[#allocation30_spill]] }
 0x8fb   : > { %p35_p7 = scmp.ge.s32.totalorder %s38_s18, 4   ;;  %s3122_s16 = sld [smem:[#allocation26_spill]] }
 0x8fc   : > { %s3123_s17 = sld [smem:[#allocation28_spill]]  ;;  %s3124_s29 = smov %s2534_s30 }
 0x8fd   : > { %s3125_s30 = smov %s2538_s15  ;;  %37 = sbr.rel (!%p35_p7) target bundleno = 21 (0x15), region = 174 }
 0x900   : > { %s3126_s15 = smov %s3121_s5 }
 0x902   :  { %1749 = vsyncpa [#allocation3], 1 }
 0x903   :  { %1751 = vsyncpa [#allocation3 + $0x1], 1 }
 0x904   :  { %1752 = vsyncpa [#allocation6], 1 }
 0x905   :  { %1754 = vsyncpa [#allocation6 + $0x1], 1 }
 0x906   :  { %1755 = vsyncpa [#allocation9], 1 }
 0x907   :  { %1757 = vsyncpa [#allocation9 + $0x1], 1 }
 0x908   :  { %1758 = vsyncpa [#allocation12], 1 }
 0x909   :  { %1759 = vsyncpa [#allocation15], 1 }
 0x90a   :  { %1760 = vsyncpa [#allocation4], 1 }
 0x90b   :  { %1762 = vsyncpa [#allocation4 + $0x1], 1 }

// kernel: tpu_custom_call.1
= control target key start
LH: loop header
LB: loop body
LE: loop exit
PB: predicated region body
PF: predicated region fallthrough
CT: control target
= control target key end

     0   :  { %s3038_s0 = inlined_call_operand.hbm [shape: f32[2,8,32], index: 0, kind: input, shape index: {}]   ;;  %s3039_s1 = inlined_call_operand.hbm [shape: f32[2,8,32], index: 1, kind: input, shape index: {}]   ;;  %s3040_s2 = inlined_call_operand.hbm [shape: f32[2,8,32], index: 2, kind: input, shape index: {}]   ;;  %s3041_s3 = inlined_call_operand.hbm [shape: f32[2,8,32], index: 3, kind: input, shape index: {}]   ;;  %s3042_s4 = inlined_call_operand.hbm [shape: f32[32,32], index: 4, kind: input, shape index: {}]   ;;  %s3043_s5 = inlined_call_operand.hbm [shape: f32[32,32], index: 5, kind: input, shape index: {}]   ;;  %s3044_s6 = inlined_call_operand.hbm [shape: f32[32,32], index: 6, kind: input, shape index: {}]   ;;  %s3045_s7 = inlined_call_operand.vmem [shape: f32[1,32], index: 7, kind: input, shape index: {}]   ;;  %s3046_s8 = inlined_call_operand.vmem [shape: f32[1,32], index: 8, kind: input, shape index: {}]   ;;  %s3047_s9 = inlined_call_operand.vmem [shape: f32[1,32], index: 9, kind: input, shape index: {}]   ;;  %s3048_s10 = inlined_call_operand.hbm [shape: f32[32,32], index: 10, kind: input, shape index: {}]   ;;  %s3049_s11 = inlined_call_operand.vmem [shape: f32[1,32], index: 11, kind: input, shape index: {}]   ;;  %s3050_s12 = inlined_call_operand.vmem [shape: f32[1,32], index: 12, kind: input, shape index: {}]   ;;  %s3051_s13 = inlined_call_operand.vmem [shape: f32[1,32], index: 13, kind: input, shape index: {}]   ;;  %s3052_s14 = inlined_call_operand.hbm [shape: f32[2,8,32], index: 14, kind: output, shape index: {}]  }
   0x1   :  { %3070 = sst [smem:[#allocation31_spill]] %s3039_s1 }
   0x2   :  { %3071 = sst [smem:[#allocation32_spill]] %s3042_s4 }
   0x3   :  { %3072 = sst [smem:[#allocation33_spill]] %s3043_s5 }
   0x4   :  { %3073 = sst [smem:[#allocation34_spill]] %s3044_s6 }
   0x5   :  { %3074 = sst [smem:[#allocation35_spill]] %s3049_s11 }
   0x6   :  { %3075 = sst [smem:[#allocation36_spill]] %s3050_s12 }
   0x7   :  { %3076 = sst [smem:[#allocation37_spill]] %s3051_s13 }
   0x8   :  { %3077 = sst [smem:[#allocation38_spill]] %s3052_s14 }
   0x9   :  { %19 = vsyncpa [#allocation3], 0 }
   0xa   :  { %21 = vsyncpa [#allocation3 + $0x1], 0 }
   0xb   :  { %22 = vsyncpa [#allocation6], 0 }
   0xc   :  { %24 = vsyncpa [#allocation6 + $0x1], 0 }
   0xd   :  { %25 = vsyncpa [#allocation9], 0 }
   0xe   :  { %27 = vsyncpa [#allocation9 + $0x1], 0 }
   0xf   :  { %28 = vsyncpa [#allocation12], 0 }
  0x10   :  { %29 = vsyncpa [#allocation15], 0 }
  0x11   :  { %30 = vsyncpa [#allocation4], 0 }
  0x12   :  { %32 = vsyncpa [#allocation4 + $0x1], 0  ;;  %s2646_s29 = smov 0   ;;  %s2648_s30 = smov 0  }
  0x13   :  { %s2650_s15 = smov 0   ;;  %s2652_s16 = smov 0  }
  0x14   :  { %s2654_s17 = smov 0   ;;  %s2656_s18 = smov 0  }
  0x15 LB: > { %3078 = sst [smem:[#allocation24_spill]] %s2530_s29  ;;  %s2677_s19 = sadd.s32 4294967295, %s2550_s18   ;;  %s2550_s18 = sphi %s2656_s18, %s38_s18   ;;  %s2546_s17 = sphi %s2654_s17, %s3123_s17   ;;  %s2542_s16 = sphi %s2652_s16, %s3122_s16   ;;  %s2538_s15 = sphi %s2650_s15, %s3126_s15   ;;  %s2534_s30 = sphi %s2648_s30, %s3125_s30   ;;  %s2530_s29 = sphi %s2646_s29, %s3124_s29  }
  0x16   : > { %3079 = sst [smem:[#allocation25_spill]] %s2542_s16  ;;  %s1917_s20 = sadd.s32 4294967294, %s2550_s18  }
  0x17   : > { %3080 = sst [smem:[#allocation26_spill]] %s2546_s17  ;;  %p72_p0 = scmp.ne.s32.totalorder %s2534_s30, %s2530_s29 }
  0x18   : > { %p3056_p1 = scmp.eq.s32.totalorder %s2677_s19, 0  ;;  %p388_p2 = scmp.eq.s32.totalorder %s2677_s19, 1 }
  0x19   : > { %p394_p3 = scmp.eq.s32.totalorder %s1917_s20, 1  ;;  %p1918_p5 = scmp.ge.s32.totalorder %s2550_s18, 1 }
  0x1a   : > { %p2686_p4 = por %p3056_p1, %p72_p0  ;;  %p401_p7 = scmp.lt.s32.totalorder %s2550_s18, 3 }
  0x1b   : > { %p2691_p6 = por %p394_p3, %p72_p0  ;;  %s2552_s24 = smov [#allocation10]  }
  0x1c   : > { %p2696_p8 = pnand %p1918_p5, %p401_p7  ;;  %s413_s25 = sshll.u32 %s2552_s24, 4  ;;  %s414_s25 = int_to_ptr.vmem [resolvable:$true] %s413_s25 }
  0x1d   : > { %s3082_s22 = scalar_select %p2691_p6, 1, 0 }
  0x1e   : > { %p2114_p9 = pneg %p2696_p8  ;;  %s2553_s27 = smov [#allocation11]  }
  0x1f   : > { %3083 = sst [smem:[#allocation27_spill]] %s3082_s22  ;;  %s426_s28 = sshll.u32 %s2553_s27, 4  ;;  %s427_s28 = int_to_ptr.vmem [resolvable:$true] %s426_s28 }
  0x20   : > { %p2705_p11 = pnand %p2114_p9, %p3056_p1  ;;  %s2245_s20 = scalar_lea.vmem %s414_s25, 512 }
  0x21   : > { %p2246_p13 = scmp.ne.s32.totalorder %s414_s25, %s2245_s20  ;;  %p2253_p5 = scmp.lt.s32.totalorder %s414_s25, %s414_s25 }
  0x22   : > { %p3066_p12 = pneg %p2705_p11  ;;  %p2254_p7 = scmp.lt.s32.totalorder %s2245_s20, %s2245_s20 }
  0x24   : > { %p2248_p0 = pnand %p2246_p13, %p3066_p12  ;;  %p2255_p10 = por %p2254_p7, %p2253_p5 }
  0x26   : > { %p2249_p3 = pneg %p2248_p0 }
  0x28   : > { %p2256_p9 = pnand %p2255_p10, %p2249_p3 }
  0x2a   : > { %2259 = shalt.err (!%p2256_p9)
}
  0x2b   : > { %s3057_s24 = smov 128   ;;  %s3059_s22 = smov 8  }
  0x2c   : > { %s3086_s4 = sld [smem:[#allocation32_spill]]  ;;  %s2271_s14 = scalar_lea.vmem %s427_s28, 512 }
  0x2d   : > { %p2272_p13 = scmp.ne.s32.totalorder %s427_s28, %s2271_s14  ;;  %p2279_p10 = scmp.lt.s32.totalorder %s427_s28, %s427_s28 }
  0x2e   : > { %p2280_p3 = scmp.lt.s32.totalorder %s2271_s14, %s2271_s14 }
  0x2f   : > { %p2274_p0 = pnand %p2272_p13, %p3066_p12 }
  0x30   : > { %p2281_p7 = por %p2280_p3, %p2279_p10 }
  0x31   : > { %p2275_p5 = pneg %p2274_p0 }
  0x32   : > { %2117 = dma.hbm_to_vmem [thread:$0]  (!%p2705_p11), %s3086_s4, 512, %s414_s25, [#allocation9], %s3057_s24, %s3057_s24, %s3059_s22  }
  0x33   : > { %p2282_p9 = pnand %p2281_p7, %p2275_p5 }
  0x35   : > { %2285 = shalt.err (!%p2282_p9)
}
  0x36   : > { %s3087_s5 = sld [smem:[#allocation33_spill]]  ;;  %s50_s14 = sadd.s32 1, %s2546_s17 }
  0x37   : > { %s59_s29 = sadd.s32 1, %s2538_s15  ;;  %p52_p13 = scmp.ge.s32.totalorder %s50_s14, 2 }
  0x38   : > { %p66_p0 = scmp.ne.s32.totalorder %s2538_s15, %s2534_s30  ;;  %p67_p5 = scmp.eq.s32.totalorder %s2550_s18, 0 }
  0x39   : > { %p2148_p10 = scmp.lt.s32.totalorder %s2550_s18, 2  ;;  %s3128_s14 = smov (%p52_p13, %s50_s14), 0 }
  0x3a   : > { %3088 = sst [smem:[#allocation28_spill]] %s3128_s14  ;;  %p68_p3 = por %p67_p5, %p66_p0 }
  0x3b   : > { %p2743_p7 = por %p388_p2, %p66_p0  ;;  %s54_s25 = ssub.s32 %s2546_s17, %s3128_s14 }
  0x3c   : > { %2120 = dma.hbm_to_vmem [thread:$0]  (!%p2705_p11), %s3087_s5, 512, %s427_s28, [#allocation12], %s3057_s24, %s3057_s24, %s3059_s22  }
  0x3d   : > { %s3089_s13 = scalar_select %p2743_p7, 1, 0 }
  0x3e   : > { %s3062_s28 = sand.u32 1, %s2538_s15   ;;  %p57_p9 = scmp.eq.s32.totalorder %s54_s25, 0 }
  0x3f   : > { %3090 = sst [smem:[#allocation29_spill]] %s3089_s13  ;;  %s2752_s27 = sshll.u32 %s3062_s28, 3 }
  0x40   : > { %s2755_s20 = sshll.u32 %s2546_s17, 7  ;;  %p2757_p1 = pnand %p2148_p10, %p68_p3 }
  0x41   : > { %s2762_s22 = scalar_select %p57_p9, %s2538_s15, %s59_s29  }
  0x42   : > { %s3067_s4 = sand.u32 1, %s2550_s18   ;;  %s3093_s1 = sld [smem:[#allocation31_spill]] }
  0x43   : > { %3092 = sst [smem:[#allocation30_spill]] %s2762_s22  ;;  %s507_s12 = scalar_lea.vmem [#allocation5], %s2752_s27 }
  0x44   : > { %s514_s28 = sshll.u32 %s507_s12, 4  ;;  %s2772_s17 = scalar_lea.sflag [#allocation6], %s3067_s4  ;;  %s515_s28 = int_to_ptr.vmem [resolvable:$true] %s514_s28 }
  0x45   : > { %p3068_p2 = pneg %p2757_p1  ;;  %s2299_s13 = scalar_lea.vmem %s515_s28, 128 }
  0x46   : > { %p2300_p13 = scmp.ne.s32.totalorder %s515_s28, %s2299_s13  ;;  %s2556_s29 = smov [#allocation5]  }
  0x47   : > { %s2304_s22 = sshll.u32 %s2556_s29, 4  ;;  %s2305_s22 = int_to_ptr.vmem [resolvable:$false] %s2304_s22 }
  0x48   : > { %s512_s25 = scalar_lea.hbm %s3093_s1, %s2755_s20  ;;  %p2302_p0 = pnand %p2300_p13, %p3068_p2 }
  0x49   : > { %s2306_s16 = scalar_lea.vmem %s2305_s22, 256  ;;  %p2307_p10 = scmp.lt.s32.totalorder %s515_s28, %s2305_s22 }
  0x4a   : > { %p2303_p5 = pneg %p2302_p0  ;;  %p2308_p3 = scmp.lt.s32.totalorder %s2306_s16, %s2299_s13 }
  0x4c   : > { %p2309_p9 = por %p2308_p3, %p2307_p10 }
  0x4e   : > { %p2310_p12 = pnand %p2309_p9, %p2303_p5 }
  0x50   : > { %2313 = shalt.err (!%p2310_p12)
}
  0x51   : > { %2133 = dma.hbm_to_vmem [thread:$0]  (!%p2757_p1), %s512_s25, 128, %s515_s28, %s2772_s17  }
  0x52   : > { %s2557_s5 = smov [#allocation13]   ;;  %s2558_s14 = smov [#allocation14]  }
  0x53   : > { %s439_s12 = sshll.u32 %s2557_s5, 4  ;;  %s461_s4 = sshll.u32 %s2558_s14, 4  ;;  %s440_s12 = int_to_ptr.vmem [resolvable:$true] %s439_s12  ;;  %s462_s4 = int_to_ptr.vmem [resolvable:$true] %s461_s4 }
  0x54   : > { %s2325_s1 = scalar_lea.vmem %s440_s12, 512  ;;  %p3094_p0 = pneg %p2705_p11 }
  0x55   : > { %p2326_p13 = scmp.ne.s32.totalorder %s440_s12, %s2325_s1  ;;  %p2333_p10 = scmp.lt.s32.totalorder %s440_s12, %s440_s12 }
  0x56   : > { %p2334_p5 = scmp.lt.s32.totalorder %s2325_s1, %s2325_s1 }
  0x57   : > { %p2328_p2 = pnand %p2326_p13, %p3094_p0 }
  0x58   : > { %p2335_p12 = por %p2334_p5, %p2333_p10 }
  0x59   : > { %p2329_p6 = pneg %p2328_p2 }
  0x5b   : > { %p2336_p3 = pnand %p2335_p12, %p2329_p6 }
  0x5d   : > { %2339 = shalt.err (!%p2336_p3)
}
  0x5e   : > { %s3095_s16 = smov 8   ;;  %s3096_s22 = smov 128  }
  0x5f   : > { %s3097_s6 = sld [smem:[#allocation34_spill]]  ;;  %s2351_s25 = scalar_lea.vmem %s462_s4, 512 }
  0x60   : > { %p2352_p9 = scmp.ne.s32.totalorder %s462_s4, %s2351_s25  ;;  %p3098_p13 = pmov %p3094_p0 }
  0x61   : > { %p2359_p7 = scmp.lt.s32.totalorder %s462_s4, %s462_s4  ;;  %p2360_p10 = scmp.lt.s32.totalorder %s2351_s25, %s2351_s25 }
  0x62   : > { %p2354_p2 = pnand %p2352_p9, %p3098_p13 }
  0x63   : > { %p2361_p6 = por %p2360_p10, %p2359_p7 }
  0x64   : > { %p2355_p0 = pneg %p2354_p2 }
  0x65   : > { %2123 = dma.hbm_to_vmem [thread:$0]  (!%p2705_p11), %s3097_s6, 512, %s440_s12, [#allocation12], %s3096_s22, %s3096_s22, %s3095_s16  }
  0x66   : > { %p2362_p5 = pnand %p2361_p6, %p2355_p0 }
  0x68   : > { %2365 = shalt.err (!%p2362_p5)
}
  0x69   : > { %2126 = dma.hbm_to_vmem [thread:$0]  (!%p2705_p11), %s3048_s10, 512, %s462_s4, [#allocation15], %s3096_s22, %s3096_s22, %s3095_s16  }
  0x6a   : > { %s494_s14 = scalar_lea.hbm %s3038_s0, %s2755_s20  ;;  %s488_s13 = scalar_lea.vmem [#allocation2], %s2752_s27 }
  0x6b   : > { %s496_s28 = sshll.u32 %s488_s13, 4  ;;  %s3099_s25 = sand.u32 1, %s2538_s15   ;;  %s497_s28 = int_to_ptr.vmem [resolvable:$true] %s496_s28 }
  0x6c   : > { %s485_s26 = scalar_lea.sflag [#allocation3], %s3099_s25  ;;  %s2379_s6 = scalar_lea.vmem %s497_s28, 128 }
  0x6d   : > { %p2380_p7 = scmp.ne.s32.totalorder %s497_s28, %s2379_s6  ;;  %p3100_p12 = pneg %p2757_p1 }
  0x6e   : > { %s2559_s1 = smov [#allocation2]  }
  0x6f   : > { %p2382_p3 = pnand %p2380_p7, %p3100_p12  ;;  %s2384_s29 = sshll.u32 %s2559_s1, 4  ;;  %s2385_s29 = int_to_ptr.vmem [resolvable:$false] %s2384_s29 }
  0x70   : > { %s2386_s11 = scalar_lea.vmem %s2385_s29, 256  ;;  %p2387_p11 = scmp.lt.s32.totalorder %s497_s28, %s2385_s29 }
  0x71   : > { %p2383_p9 = pneg %p2382_p3  ;;  %p2388_p13 = scmp.lt.s32.totalorder %s2386_s11, %s2379_s6 }
  0x73   : > { %p2389_p2 = por %p2388_p13, %p2387_p11 }
  0x75   : > { %p2390_p0 = pnand %p2389_p2, %p2383_p9 }
  0x77   : > { %2393 = shalt.err (!%p2390_p0)
}
  0x78   : > { %2130 = dma.hbm_to_vmem [thread:$0]  (!%p2757_p1), %s494_s14, 128, %s497_s28, %s485_s26  }
  0x79   : > { %s530_s22 = scalar_lea.hbm %s3040_s2, %s2755_s20  ;;  %s525_s5 = scalar_lea.vmem [#allocation7], %s2752_s27 }
  0x7a   : > { %s532_s12 = sshll.u32 %s525_s5, 4  ;;  %p3101_p6 = pmov %p3100_p12  ;;  %s533_s12 = int_to_ptr.vmem [resolvable:$true] %s532_s12 }
  0x7b   : > { %s2407_s13 = scalar_lea.vmem %s533_s12, 128  ;;  %s2560_s6 = smov [#allocation7]  }
  0x7c   : > { %p2408_p10 = scmp.ne.s32.totalorder %s533_s12, %s2407_s13  ;;  %s2412_s11 = sshll.u32 %s2560_s6, 4  ;;  %s2413_s11 = int_to_ptr.vmem [resolvable:$false] %s2412_s11 }
  0x7d   : > { %s2414_s25 = scalar_lea.vmem %s2413_s11, 256  ;;  %p2415_p12 = scmp.lt.s32.totalorder %s533_s12, %s2413_s11 }
  0x7e   : > { %p2410_p5 = pnand %p2408_p10, %p3101_p6  ;;  %p2416_p3 = scmp.lt.s32.totalorder %s2414_s25, %s2407_s13 }
  0x80   : > { %p2411_p7 = pneg %p2410_p5  ;;  %p2417_p9 = por %p2416_p3, %p2415_p12 }
  0x82   : > { %p2418_p11 = pnand %p2417_p9, %p2411_p7 }
  0x84   : > { %2421 = shalt.err (!%p2418_p11)
}
  0x85   : > { %2136 = dma.hbm_to_vmem [thread:$0]  (!%p2757_p1), %s530_s22, 128, %s533_s12, %s2772_s17  }
  0x86   : > { %s549_s26 = scalar_lea.hbm %s3041_s3, %s2755_s20  ;;  %s543_s1 = scalar_lea.vmem [#allocation8], %s2752_s27 }
  0x87   : > { %s551_s29 = sshll.u32 %s543_s1, 4  ;;  %s3102_s4 = sand.u32 1, %s2550_s18   ;;  %s552_s29 = int_to_ptr.vmem [resolvable:$true] %s551_s29 }
  0x88   : > { %s540_s16 = scalar_lea.sflag [#allocation9], %s3102_s4  ;;  %s2435_s5 = scalar_lea.vmem %s552_s29, 128 }
  0x89   : > { %p2436_p13 = scmp.ne.s32.totalorder %s552_s29, %s2435_s5  ;;  %p3103_p2 = pmov %p3101_p6 }
  0x8a   : > { %s2561_s13 = smov [#allocation8]  }
  0x8b   : > { %p2438_p0 = pnand %p2436_p13, %p3103_p2  ;;  %s2440_s6 = sshll.u32 %s2561_s13, 4  ;;  %s2441_s6 = int_to_ptr.vmem [resolvable:$false] %s2440_s6 }
  0x8c   : > { %s2442_s11 = scalar_lea.vmem %s2441_s6, 256  ;;  %p2443_p6 = scmp.lt.s32.totalorder %s552_s29, %s2441_s6 }
  0x8d   : > { %p2439_p10 = pneg %p2438_p0  ;;  %p2444_p5 = scmp.lt.s32.totalorder %s2442_s11, %s2435_s5 }
  0x8f   : > { %p2445_p7 = por %p2444_p5, %p2443_p6 }
  0x91   : > { %p2446_p12 = pnand %p2445_p7, %p2439_p10 }
  0x93   : > { %2449 = shalt.err (!%p2446_p12)
}
  0x94   : > { %2139 = dma.hbm_to_vmem [thread:$0]  (!%p2757_p1), %s549_s26, 128, %s552_s29, %s540_s16  }
  0x95   : > { %560 = sbr.rel (%p2696_p8) target bundleno = 2284 (0x8ec), region = 76  ;;  %s2842_s17 = sand.u32 (!%p2696_p8), 1, %s2534_s30  }
  0x96   : > { %s2845_s27 = sshll.u32 (!%p2696_p8), %s2842_s17, 3  ;;  %s563_s20 = scalar_lea.sflag (!%p2696_p8), [#allocation3], %s2842_s17 }
  0x97   : > { %s566_s22 = scalar_lea.vmem (!%p2696_p8), [#allocation2], %s2845_s27 }
  0x9a   : > { %2501 = dma.done.wait (%p2686_p4), %s563_s20, 128  }
  0x9b   : > { %2503 = vsyncadd (%p2686_p4), %s563_s20, 4294967168  ;;  %s571_s23 = sand.u32 1, %s2677_s19   ;;  %s575_s12 = scalar_lea.vmem [#allocation5], %s2845_s27 }
  0x9c   : > { %s572_s24 = scalar_lea.sflag [#allocation6], %s571_s23 }
  0x9d   : > { %2505 = dma.done.wait (%p2686_p4), %s572_s24, 256  }
  0x9e   : > { %2507 = vsyncadd (%p2686_p4), %s572_s24, 4294967040  ;;  %s584_s25 = scalar_lea.vmem [#allocation7], %s2845_s27  ;;  %s590_s14 = scalar_lea.sflag [#allocation9], %s571_s23 }
  0x9f   : > { %s593_s28 = scalar_lea.vmem [#allocation8], %s2845_s27 }
  0xa0   : > { %2509 = dma.done.wait (%p2686_p4), %s590_s14, 128  }
  0xa1   : > { %2511 = vsyncadd (%p2686_p4), %s590_s14, 4294967168  ;;  %p3104_p1 = scmp.eq.s32.totalorder %s2677_s19, 0 }
  0xa3   : > { %2513 = dma.done.wait (%p3104_p1), [#allocation9], 512   ;;  %p3105_p8 = pmov %p3104_p1 }
  0xa4   : > { %p3106_p3 = pmov %p3104_p1 }
  0xa5   : > { %2515 = vsyncadd (%p3105_p8), [#allocation9], 4294966784 }
  0xa6   : > { %2517 = dma.done.wait (%p3106_p3), [#allocation12], 1024   ;;  %p3107_p9 = pmov %p3104_p1 }
  0xa7   : > { %p3108_p11 = pmov %p3104_p1 }
  0xa8   : > { %2519 = vsyncadd (%p3107_p9), [#allocation12], 4294966272 }
  0xa9   : > { %2521 = dma.done.wait (%p3108_p11), [#allocation15], 512   ;;  %p3109_p13 = pmov %p3104_p1 }
  0xaa   : > { %v2562_v0 = vmov 0.0   ;;  %vm2563_vm0 = vmmov 0   ;;  %v760_v1 = vld [vmem:[#allocation11 + $0x18] sm:$0xff]  ;;  %v759_v3 = vld [vmem:[#allocation11 + $0x10] sm:$0xff]  ;;  %v758_v5 = vld [vmem:[#allocation11 + $0x8] sm:$0xff]  ;;  %vm681_vm1 = vcmask 261120  }
  0xab   : > { %2523 = vsyncadd (%p3109_p13), [#allocation15], 4294966784  ;;  %2015 = vmatprep.subr.mxu1 %v2562_v0  ;;  %2004 = vmatprep.subr.mxu0 %v2562_v0  ;;  %v673_v2 = vld [vmem:[#allocation10 + $0x18] sm:$0xff]  ;;  %v672_v4 = vld [vmem:[#allocation10 + $0x10] sm:$0xff]  ;;  %vm925_vm2 = vcmask 64512   ;;  %s2564_s29 = smov 120  }
  0xac   : > { %2023 = vmatprep.mubr.msk.f32.mxu1 %vm2563_vm0, %v2562_v0  ;;  %2012 = vmatprep.mubr.msk.f32.mxu0 %vm2563_vm0, %v2562_v0  ;;  %v671_v6 = vld [vmem:[#allocation10 + $0x8] sm:$0xff]  ;;  %v757_v7 = vld [vmem:[#allocation11] sm:$0xff]  ;;  %v755_v9 = vld [vmem:[%s575_s12] sm:$0xff]  ;;  %s2565_s4 = smov 112   ;;  %s2566_s16 = smov 104   ;;  %vm1595_vm3 = vcmask 130048  }
  0xad   : > { %2016 = vmatpush3.msra.mxu1 %v760_v1  ;;  %2005 = vmatpush3.msra.mxu0 %v673_v2  ;;  %v670_v8 = vld [vmem:[#allocation10] sm:$0xff]  ;;  %v844_v19 = vld [vmem:[#allocation13 + $0x18] sm:$0xff]  ;;  %v843_v20 = vld [vmem:[#allocation13 + $0x10] sm:$0xff]  ;;  %s2567_s6 = smov 8   ;;  %s2568_s11 = smov 16   ;;  %vm1597_vm4 = vcmask 195584  }
  0xae   : > { %2017 = vmatprep.subr.mxu1 %v2562_v0  ;;  %2006 = vmatprep.subr.mxu0 %v2562_v0  ;;  %v669_v10 = vld [vmem:[%s566_s22] sm:$0xff]  ;;  %s2569_s20 = smov 24   ;;  %s3110_s24 = sld [smem:[#allocation35_spill]] }
  0xaf   : > { %2018 = vmatpush3.msra.mxu1 %v759_v3  ;;  %2007 = vmatpush3.msra.mxu0 %v672_v4  ;;  %v1944_v11 = vld [vmem:[%s3046_s8] ss:$0 sm:$0xff]  ;;  %v842_v21 = vld [vmem:[#allocation13 + $0x8] sm:$0xff]  ;;  %s3111_s12 = sld [smem:[#allocation25_spill]]  ;;  %s2570_s23 = smov [#allocation16]  }
  0xb0   : > { %2019 = vmatprep.subr.mxu1 %v2562_v0  ;;  %2008 = vmatprep.subr.mxu0 %v2562_v0  ;;  %v1942_v12 = vld [vmem:[%s3045_s7] ss:$0 sm:$0xff]  ;;  %s3113_s19 = sld [smem:[#allocation36_spill]] }
  0xb1   : > { %2020 = vmatpush3.msra.mxu1 %v758_v5  ;;  %2009 = vmatpush3.msra.mxu0 %v671_v6  ;;  %v841_v22 = vld [vmem:[#allocation13] sm:$0xff]  ;;  %s3114_s1 = sld [smem:[#allocation37_spill]] }
  0xb2   : > { %2021 = vmatprep.subr.mxu1 %v2562_v0  ;;  %2010 = vmatprep.subr.mxu0 %v2562_v0  ;;  %v756_v23 = vld [vmem:[%s584_s25] sm:$0xff]  ;;  %s3112_s25 = sld [smem:[#allocation29_spill]] }
  0xb3   : > { %2022 = vmatpush3.msra.mxu1 %v757_v7  ;;  %2011 = vmatpush3.msra.mxu0 %v670_v8  ;;  %v1946_v32 = vld [vmem:[%s3047_s9] ss:$0 sm:$0xff] }
  0xb4   : > { %2024 = vmatmul.mubr.msk.f32.vlgmr.msra.gmra.mxu1 %vm681_vm1, %v755_v9  ;;  %2013 = vmatmul.mubr.msk.f32.vlgmr.msra.gmra.mxu0 %vm681_vm1, %v669_v10 }
  0xb5   : > { %2037 = vmatprep.subr.mxu1 %v2562_v0  ;;  %2039 = vmatprep.mubr.msk.f32.mxu1 %vm2563_vm0, %v2562_v0 }
  0xb6   : > { %2026 = vmatprep.subr.mxu0 %v2562_v0  ;;  %2034 = vmatprep.mubr.msk.f32.mxu0 %vm2563_vm0, %v2562_v0 }
  0xb7   : > { %2027 = vmatpush3.msra.mxu0 %v844_v19 }
  0xb8   : > { %2028 = vmatprep.subr.mxu0 %v2562_v0  ;;  %p3116_p2 = scmp.ne.s32.totalorder %s3112_s25, 0 }
  0xb9   : > { %2029 = vmatpush3.msra.mxu0 %v843_v20  ;;  %v1602_v20 = vld [vmem:[#allocation14 + $0x18] sm:$0xff] }
  0xba   : > { %2030 = vmatprep.subr.mxu0 %v2562_v0 }
  0xbb   : > { %2031 = vmatpush3.msra.mxu0 %v842_v21  ;;  %v1601_v21 = vld [vmem:[#allocation14 + $0x10] sm:$0xff] }
  0xbc   : > { %2032 = vmatprep.subr.mxu0 %v2562_v0 }
  0xbd   : > { %2033 = vmatpush3.msra.mxu0 %v841_v22  ;;  %v1600_v22 = vld [vmem:[#allocation14 + $0x8] sm:$0xff] }
  0xbe   : > { %2035 = vmatmul.mubr.msk.f32.vlgmr.msra.gmra.mxu0 %vm681_vm1, %v756_v23  ;;  %2057 = vmatprep.subr.mxu0 %v2562_v0  ;;  %v1599_v23 = vld [vmem:[#allocation14] sm:$0xff] }
  0xbf   : > { %2059 = vmatprep.mubr.msk.f32.mxu0 %vm2563_vm0, %v2562_v0 }
 0x174   : > { %v837_v13 = vpop.f32.mrf.mxu1  ;;  %v751_v14 = vpop.f32.mrf.mxu0 }
 0x175   : > { %v838_v15 = vadd.f32 %v1944_v11, %v837_v13  ;;  %v752_v16 = vadd.f32 %v1942_v12, %v751_v14 }
 0x176   : > { %v2025_v17 = vpop.f32.mrf.mxu1  ;;  %v2014_v18 = vpop.f32.mrf.mxu0 }
 0x177   : > { %1088 = vrot.lane.b32.xlu1 %v838_v15, %s2564_s29  ;;  %2038 = vmatpush3.xpose.msk.msra.mxu1 %vm925_vm2, %v838_v15 }
 0x178   : > { %2042 = vmatprep.subr.mxu1 %v2562_v0 }
 0x17a   : > { %2040 = vmatmul.mubr.msk.f32.vlgmr.msra.gmra.mxu1 %vm925_vm2, %v752_v16 }
 0x17b   : > { %1086 = vrot.lane.b32.xlu1 %v752_v16, %s2564_s29  ;;  %2044 = vmatprep.mubr.msk.f32.mxu1 %vm2563_vm0, %v2562_v0 }
 0x17e   : > { %v921_v33 = vpop.f32.mrf.mxu0 }
 0x17f   : > { %1252 = vrot.lane.b32.xlu1 %v752_v16, %s2565_s4  ;;  %v2931_v34 = vadd.f32 %v1946_v32, %v921_v33 }
 0x180   : > { %v2036_v35 = vpop.f32.mrf.mxu0 }
 0x181   : > { %2043 = vmatpush3.msra.mxu1 %v2931_v34  ;;  %v1960_v35 = vld [vmem:[%s3110_s24] ss:$0 sm:$0xff]  ;;  %s2454_s24 = sshll.u32 %s2570_s23, 4  ;;  %s2455_s24 = int_to_ptr.vmem [resolvable:$false] %s2454_s24 }
 0x182   : > { %2047 = vmatprep.subr.mxu1 %v2562_v0 }
 0x183   : > { %1419 = vrot.lane.b32.xlu1 %v838_v15, %s2566_s16 }
 0x187   : > { %1417 = vrot.lane.b32.xlu1 %v752_v16, %s2566_s16 }
 0x1e9   : > { %v1089_v36 = vpop.permute.xlu1 %1088 }
 0x1ed   : > { %v1087_v37 = vpop.permute.xlu1 %1086 }
 0x1f1   : > { %v1253_v38 = vpop.permute.xlu1 %1252 }
 0x1f5   : > { %v1420_v41 = vpop.permute.xlu1 %1419 }
 0x1f9   : > { %v1418_v42 = vpop.permute.xlu1 %1417 }
 0x23a   : > { %v998_v24 = vpop.f32.mrf.mxu1 }
 0x23b   : > { %v1002_v25 = vsel %vm925_vm2, %v998_v24, -inf }
 0x23c   : > { %1003 = vmax.xlane.f32.xlu0 %v1002_v25  ;;  %v2041_v26 = vpop.f32.mrf.mxu1 }
 0x2c5   : > { %v1004_v27 = vpop.xlane.xlu0 %1003 }
 0x2c6   : > { %v1005_v28 = vsub.f32 %v998_v24, %v1004_v27 }
 0x2c8   : > { %v1006_v29 = vmul.f32 1.442695, %v1005_v28 }
 0x2ca   : > { %2216 = vpow2.f32 %v1006_v29 }
 0x2d7   : > { %v2217_v30 = vpop.eup %2216 }
 0x2d8   : > { %v1008_v31 = vsel %vm925_vm2, %v2217_v30, 0.0 }
 0x2d9   : > { %1009 = vadd.xlane.f32.xlu0 %v1008_v31 }
 0x2ef   : > { %1254 = vrot.lane.b32.xlu0 %v838_v15, %s2565_s4 }
 0x362   : > { %v1010_v39 = vpop.xlane.xlu0 %1009 }
 0x363   : > { %2218 = vrcp.f32 %v1010_v39 }
 0x366   : > { %v1255_v40 = vpop.permute.xlu0 %1254 }
 0x367   : > { %2058 = vmatpush3.xpose.msk.msra.mxu0 %vm925_vm2, %v1255_v40 }
 0x368   : > { %2067 = vmatprep.subr.mxu0 %v2562_v0 }
 0x36a   : > { %2060 = vmatmul.mubr.msk.f32.vlgmr.msra.gmra.mxu0 %vm925_vm2, %v1253_v38 }
 0x36b   : > { %2068 = vmatpush3.xpose.msk.msra.mxu0 %vm925_vm2, %v1420_v41  ;;  %2069 = vmatprep.mubr.msk.f32.mxu0 %vm2563_vm0, %v2562_v0 }
 0x36c   : > { %2077 = vmatprep.subr.mxu0 %v2562_v0 }
 0x36e   : > { %2070 = vmatmul.mubr.msk.f32.vlgmr.msra.gmra.mxu0 %vm925_vm2, %v1418_v42 }
 0x36f   : > { %2085 = vmatprep.mubr.msk.f32.mxu0 %vm2563_vm0, %v2562_v0  ;;  %2078 = vmatpush3.msra.mxu0 %v1602_v20 }
 0x370   : > { %v2219_v43 = vpop.eup %2218  ;;  %2079 = vmatprep.subr.mxu0 %v2562_v0 }
 0x371   : > { %v1012_v44 = vmul.f32 %v2219_v43, %v2217_v30  ;;  %2080 = vmatpush3.msra.mxu0 %v1601_v21 }
 0x372   : > { %2081 = vmatprep.subr.mxu0 %v2562_v0 }
 0x373   : > { %2045 = vmatmul.mubr.msk.f32.vlgmr.msra.gmra.mxu1 %vm925_vm2, %v1012_v44  ;;  %2082 = vmatpush3.msra.mxu0 %v1600_v22 }
 0x374   : > { %2048 = vmatpush3.xpose.msk.msra.mxu1 %vm925_vm2, %v1089_v36  ;;  %2049 = vmatprep.mubr.msk.f32.mxu1 %vm2563_vm0, %v2562_v0 }
 0x375   : > { %2052 = vmatprep.subr.mxu1 %v2562_v0  ;;  %2083 = vmatprep.subr.mxu0 %v2562_v0 }
 0x376   : > { %2084 = vmatpush3.msra.mxu0 %v1599_v23 }
 0x377   : > { %2050 = vmatmul.mubr.msk.f32.vlgmr.msra.gmra.mxu1 %vm925_vm2, %v1087_v37  ;;  %v1683_v37 = vld [vmem:[%s593_s28] sm:$0xff] }
 0x378   : > { %2054 = vmatprep.mubr.msk.f32.mxu1 %vm2563_vm0, %v2562_v0 }
 0x42a   : > { %v1326_v45 = vpop.f32.mrf.mxu0 }
 0x42b   : > { %v1330_v46 = vsel %vm925_vm2, %v1326_v45, -inf }
 0x42c   : > { %1331 = vmax.xlane.f32.xlu0 %v1330_v46  ;;  %v2061_v47 = vpop.f32.mrf.mxu0 }
 0x42e   : > { %v1491_v48 = vpop.f32.mrf.mxu0 }
 0x42f   : > { %v1495_v55 = vsel %vm925_vm2, %v1491_v48, -inf }
 0x430   : > { %v2071_v49 = vpop.f32.mrf.mxu0 }
 0x433   : > { %v2955_v50 = vpop.f32.mrf.mxu1 }
 0x435   : > { %v2046_v51 = vpop.f32.mrf.mxu1 }
 0x436   : > { %v1962_v51 = vld [vmem:[%s3113_s19] ss:$0 sm:$0xff] }
 0x437   : > { %v1160_v52 = vpop.f32.mrf.mxu1 }
 0x438   : > { %v1164_v53 = vsel %vm925_vm2, %v1160_v52, -inf }
 0x439   : > { %1165 = vmax.xlane.f32.xlu1 %v1164_v53  ;;  %v2051_v54 = vpop.f32.mrf.mxu1  ;;  %v1963_v53 = vld [vmem:[%s3114_s1] ss:$0 sm:$0xff] }
 0x43d   : > { %1496 = vmax.xlane.f32.xlu1 %v1495_v55 }
 0x4b5   : > { %v1332_v56 = vpop.xlane.xlu0 %1331 }
 0x4b6   : > { %v1333_v57 = vsub.f32 %v1326_v45, %v1332_v56 }
 0x4b8   : > { %v1334_v58 = vmul.f32 1.442695, %v1333_v57 }
 0x4ba   : > { %2220 = vpow2.f32 %v1334_v58 }
 0x4c2   : > { %v1166_v59 = vpop.xlane.xlu1 %1165 }
 0x4c3   : > { %v1167_v4 = vsub.f32 %v1160_v52, %v1166_v59 }
 0x4c5   : > { %v1168_v5 = vmul.f32 1.442695, %v1167_v4 }
 0x4c6   : > { %v1497_v60 = vpop.xlane.xlu1 %1496 }
 0x4c7   : > { %v2221_v61 = vpop.eup %2220  ;;  %v1498_v62 = vsub.f32 %v1491_v48, %v1497_v60 }
 0x4c8   : > { %v1336_v63 = vsel %vm925_vm2, %v2221_v61, 0.0 }
 0x4c9   : > { %v1499_v1 = vmul.f32 1.442695, %v1498_v62  ;;  %1337 = vadd.xlane.f32.xlu0 %v1336_v63 }
 0x4cb   : > { %2222 = vpow2.f32 %v1499_v1 }
 0x4cc   : > { %2224 = vpow2.f32 %v1168_v5 }
 0x4d8   : > { %v2223_v2 = vpop.eup %2222 }
 0x4d9   : > { %v1501_v3 = vsel %vm925_vm2, %v2223_v2, 0.0  ;;  %v2225_v6 = vpop.eup %2224 }
 0x4da   : > { %1502 = vadd.xlane.f32.xlu1 %v1501_v3  ;;  %v1170_v7 = vsel %vm925_vm2, %v2225_v6, 0.0 }
 0x4df   : > { %1176 = vrot.lane.b32.xlu0 %v2931_v34, %s2564_s29  ;;  %s1965_s29 = sshll.u32 %s3111_s12, 7 }
 0x4eb   : > { %1341 = vrot.lane.b32.xlu1 %v2931_v34, %s2565_s4  ;;  %s668_s4 = scalar_lea.vmem [#allocation16], %s2845_s27  ;;  %s2456_s27 = scalar_lea.vmem %s2455_s24, 256 }
 0x50f   : > { %1171 = vadd.xlane.f32.xlu1 %v1170_v7 }
 0x520   : > { %1506 = vrot.lane.b32.xlu1 %v2931_v34, %s2566_s16  ;;  %s1731_s16 = sshll.u32 %s668_s4, 4  ;;  %s1732_s16 = int_to_ptr.vmem [resolvable:$true] %s1731_s16 }
 0x521   : > { %s2450_s22 = scalar_lea.vmem %s1732_s16, 128  ;;  %p2457_p6 = scmp.lt.s32.totalorder %s1732_s16, %s2455_s24 }
 0x522   : > { %p2451_p4 = scmp.ne.s32.totalorder %s1732_s16, %s2450_s22  ;;  %p2458_p5 = scmp.lt.s32.totalorder %s2456_s27, %s2450_s22 }
 0x524   : > { %p2452_p0 = pnand %p2451_p4, %p3116_p2  ;;  %p2459_p7 = por %p2458_p5, %p2457_p6 }
 0x526   : > { %p2453_p10 = pneg %p2452_p0 }
 0x528   : > { %p2460_p12 = pnand %p2459_p7, %p2453_p10 }
 0x552   : > { %v1338_v8 = vpop.xlane.xlu0 %1337 }
 0x556   : > { %v1177_v9 = vpop.permute.xlu0 %1176 }
 0x557   : > { %2053 = vmatpush3.msra.mxu1 %v1177_v9 }
 0x558   : > { %2062 = vmatprep.subr.mxu1 %v2562_v0 }
 0x563   : > { %v1503_v10 = vpop.xlane.xlu1 %1502 }
 0x567   : > { %v1342_v11 = vpop.permute.xlu1 %1341 }
 0x598   : > { %v1172_v12 = vpop.xlane.xlu1 %1171 }
 0x599   : > { %2226 = vrcp.f32 %v1172_v12 }
 0x59a   : > { %2228 = vrcp.f32 %v1338_v8 }
 0x59b   : > { %2230 = vrcp.f32 %v1503_v10 }
 0x59c   : > { %v1507_v18 = vpop.permute.xlu1 %1506 }
 0x5a6   : > { %v2227_v13 = vpop.eup %2226 }
 0x5a7   : > { %v1174_v14 = vmul.f32 %v2227_v13, %v2225_v6  ;;  %v2229_v15 = vpop.eup %2228 }
 0x5a8   : > { %v1340_v16 = vmul.f32 %v2229_v15, %v2221_v61  ;;  %v2231_v17 = vpop.eup %2230 }
 0x5a9   : > { %2055 = vmatmul.mubr.msk.f32.vlgmr.msra.gmra.mxu1 %vm925_vm2, %v1174_v14  ;;  %v1505_v19 = vmul.f32 %v2231_v17, %v2223_v2 }
 0x5aa   : > { %2063 = vmatpush3.msra.mxu1 %v1342_v11  ;;  %2064 = vmatprep.mubr.msk.f32.mxu1 %vm2563_vm0, %v2562_v0 }
 0x5ab   : > { %2072 = vmatprep.subr.mxu1 %v2562_v0 }
 0x5ad   : > { %2065 = vmatmul.mubr.msk.f32.vlgmr.msra.gmra.mxu1 %vm925_vm2, %v1340_v16 }
 0x5ae   : > { %2073 = vmatpush3.msra.mxu1 %v1507_v18  ;;  %2074 = vmatprep.mubr.msk.f32.mxu1 %vm2563_vm0, %v2562_v0 }
 0x5b1   : > { %2075 = vmatmul.mubr.msk.f32.vlgmr.msra.gmra.mxu1 %vm925_vm2, %v1505_v19 }
 0x669   : > { %v1248_v24 = vpop.f32.mrf.mxu1 }
 0x66a   : > { %1583 = vrot.lane.b32.xlu0 %v1248_v24, %s2567_s6  ;;  %s3115_s6 = sld [smem:[#allocation38_spill]] }
 0x66b   : > { %v2056_v25 = vpop.f32.mrf.mxu1 }
 0x66d   : > { %v1413_v26 = vpop.f32.mrf.mxu1 }
 0x66e   : > { %1587 = vrot.lane.b32.xlu1 %v1413_v26, %s2568_s11 }
 0x66f   : > { %v2066_v27 = vpop.f32.mrf.mxu1 }
 0x670   : > { %s1729_s11 = scalar_lea.hbm %s3115_s6, %s1965_s29 }
 0x671   : > { %v1578_v28 = vpop.f32.mrf.mxu1 }
 0x672   : > { %1591 = vrot.lane.b32.xlu0 %v1578_v28, %s2569_s20  ;;  %s1717_s20 = scalar_lea.sflag [#allocation4], %s2842_s17 }
 0x673   : > { %v2076_v29 = vpop.f32.mrf.mxu1 }
 0x6dc   : > { %v1584_v30 = vpop.permute.xlu0 %1583 }
 0x6dd   : > { %v1594_v0 = vsel %vm925_vm2, %v2955_v50, %v1584_v30 }
 0x6e0   : > { %v1588_v31 = vpop.permute.xlu1 %1587 }
 0x6e1   : > { %v1596_v32 = vsel %vm1595_vm3, %v1594_v0, %v1588_v31 }
 0x6e4   : > { %v1592_v33 = vpop.permute.xlu0 %1591 }
 0x6e5   : > { %v1598_v34 = vsel %vm1597_vm4, %v1596_v32, %v1592_v33 }
 0x6e6   : > { %2086 = vmatmul.mubr.msk.f32.vlgmr.msra.gmra.mxu0 %vm681_vm1, %v1598_v34 }
 0x7a6   : > { %v1679_v36 = vpop.f32.mrf.mxu0 }
 0x7a7   : > { %v1680_v38 = vadd.f32 %v1960_v35, %v1679_v36 }
 0x7a8   : > { %v2087_v39 = vpop.f32.mrf.mxu0 }
 0x7a9   : > { %v1684_v40 = vadd.f32 %v1683_v37, %v1680_v38 }
 0x7ab   : > { %v1685_v41 = vsel %vm681_vm1, %v1684_v40, 0.0 }
 0x7ac   : > { %1686 = vadd.xlane.f32.xlu1 %v1685_v41 }
 0x835   : > { %v1687_v42 = vpop.xlane.xlu1 %1686 }
 0x836   : > { %v1689_v43 = vmul.f32 0.03125, %v1687_v42 }
 0x838   : > { %v1690_v44 = vsub.f32 %v1684_v40, %v1689_v43 }
 0x83a   : > { %v1691_v45 = vmul.f32 %v1690_v44, %v1690_v44 }
 0x83c   : > { %v1692_v46 = vsel %vm681_vm1, %v1691_v45, 0.0 }
 0x83d   : > { %1693 = vadd.xlane.f32.xlu0 %v1692_v46 }
 0x8c6   : > { %v1694_v47 = vpop.xlane.xlu0 %1693 }
 0x8c7   : > { %v1695_v48 = vmul.f32 0.03125, %v1694_v47 }
 0x8c9   : > { %v1696_v49 = vadd.f32 1e-05, %v1695_v48 }
 0x8cb   : > { %2232 = vrsqrt.f32 %v1696_v49 }
 0x8d8   : > { %v2233_v50 = vpop.eup %2232 }
 0x8d9   : > { %v1698_v52 = vmul.f32 %v2233_v50, %v1690_v44 }
 0x8db   : > { %v1706_v54 = vmul.f32 %v1962_v51, %v1698_v52 }
 0x8dd   : > { %v1714_v55 = vadd.f32 %v1963_v53, %v1706_v54 }
 0x8df   : > { %1715 = vst.msk [vmem:[%s668_s4] sm:$0xff] %vm681_vm1, %v1714_v55 }
 0x8e0   : > { %2463 = shalt.err (!%p2460_p12)
}
 0x8e1   : > { %s2464_s12 = scalar_lea.hbm %s1729_s11, 128  ;;  %s2468_s28 = scalar_lea.hbm %s3115_s6, 256 }
 0x8e2   : > { %p2465_p1 = scmp.ne.s32.totalorder %s1729_s11, %s2464_s12  ;;  %p2469_p9 = scmp.lt.s32.totalorder %s1729_s11, %s3115_s6 }
 0x8e3   : > { %p2470_p11 = scmp.lt.s32.totalorder %s2468_s28, %s2464_s12 }
 0x8e4   : > { %p2466_p8 = pnand %p2465_p1, %p3116_p2 }
 0x8e5   : > { %p2471_p13 = por %p2470_p11, %p2469_p9 }
 0x8e6   : > { %p2467_p3 = pneg %p2466_p8 }
 0x8e8   : > { %p2472_p4 = pnand %p2471_p13, %p2467_p3 }
 0x8ea   : > { %2475 = shalt.err (!%p2472_p4)
}
 0x8eb   : > { %2112 = dma.vmem_to_hbm [thread:$0]  (%p3116_p2), %s1732_s16, 128, %s1729_s11, %s1717_s20  }
 0x8ec PF: > { %s3117_s26 = sld [smem:[#allocation24_spill]]  ;;  %p3120_p10 = scmp.ge.s32.totalorder %s2550_s18, 2 }
 0x8ed   : > { %s3118_s1 = sld [smem:[#allocation27_spill]] }
 0x8f2   : > { %s1743_s29 = sand.u32 1, %s3117_s26  }
 0x8f3   : > { %p3119_p0 = scmp.ne.s32.totalorder %s3118_s1, 0  ;;  %s1744_s4 = scalar_lea.sflag [#allocation4], %s1743_s29 }
 0x8f5   : > { %p2141_p6 = pnand %p3120_p10, %p3119_p0 }
 0x8f7   : > { %p2142_p5 = pneg %p2141_p6 }
 0x8f9   : > { %2525 = dma.done.wait (%p2142_p5), %s1744_s4, 128  }
 0x8fa   : > { %2527 = vsyncadd (%p2142_p5), %s1744_s4, 4294967168  ;;  %s38_s18 = sadd.s32 1, %s2550_s18   ;;  %s3121_s5 = sld [smem:[#allocation30_spill]] }
 0x8fb   : > { %p35_p7 = scmp.ge.s32.totalorder %s38_s18, 4   ;;  %s3122_s16 = sld [smem:[#allocation26_spill]] }
 0x8fc   : > { %s3123_s17 = sld [smem:[#allocation28_spill]]  ;;  %s3124_s29 = smov %s2534_s30 }
 0x8fd   : > { %s3125_s30 = smov %s2538_s15  ;;  %37 = sbr.rel (!%p35_p7) target bundleno = 21 (0x15), region = 174 }
 0x900   : > { %s3126_s15 = smov %s3121_s5 }
 0x902   :  { %1749 = vsyncpa [#allocation3], 1 }
 0x903   :  { %1751 = vsyncpa [#allocation3 + $0x1], 1 }
 0x904   :  { %1752 = vsyncpa [#allocation6], 1 }
 0x905   :  { %1754 = vsyncpa [#allocation6 + $0x1], 1 }
 0x906   :  { %1755 = vsyncpa [#allocation9], 1 }
 0x907   :  { %1757 = vsyncpa [#allocation9 + $0x1], 1 }
 0x908   :  { %1758 = vsyncpa [#allocation12], 1 }
 0x909   :  { %1759 = vsyncpa [#allocation15], 1 }
 0x90a   :  { %1760 = vsyncpa [#allocation4], 1 }
 0x90b   :  { %1762 = vsyncpa [#allocation4 + $0x1], 1 }

</bundles_post_ra>
